<compile_context>
chip_gen: v6e
topology: v6e:2x2x1
jax: 0.10.0
libtpu: 0.0.40
codegen_flags: <defaults>
</compile_context>

<pallas_src>
import functools

import jax
import jax.numpy as jnp
from jax import lax
from jax.experimental import pallas as pl
from jax.experimental.pallas import tpu as pltpu

PARAM_NAMES = ("fc1.weight", "fc1.bias",
               "fc2.weight", "fc2.bias",
               "linear_out.weight", "linear_out.bias")

# dot_general dimension_numbers (no transposes materialized):
_C11 = (((1,), (1,)), ((), ()))   # contract dim1(lhs) with dim1(rhs):  x@W.T for W[out,in]
_C10 = (((1,), (0,)), ((), ()))   # contract dim1(lhs) with dim0(rhs):  dz @ W
_C00 = (((0,), (0,)), ((), ()))   # contract dim0(lhs) with dim0(rhs):  dz.T @ h  (grad of W)


def _inner_step(x, y, params, lr, inv_n2):
    """One MAML inner step: MLP forward, MSE backward, SGD fast-weight update."""
    w1, b1, w2, b2, w3, b3 = params

    # ---- forward:  F.linear(x, W, b) = x @ W.T + b,  ReLU in between ----
    z1 = lax.dot_general(x, w1, _C11, preferred_element_type=jnp.float32) + b1   # [N, H1]
    h1 = jnp.maximum(z1, 0.0)
    z2 = lax.dot_general(h1, w2, _C11, preferred_element_type=jnp.float32) + b2  # [N, H2]
    h2 = jnp.maximum(z2, 0.0)
    # output layer has out_dim == 1: broadcast + lane reduction (avoids 1-lane MXU output)
    pred = jnp.sum(h2 * w3, axis=-1, keepdims=True) + b3                          # [N, 1]

    # ---- backward of loss = mean((pred - y)^2) ----
    dpred = inv_n2 * (pred - y)                                                   # [N, 1]

    dw3 = jnp.sum(dpred * h2, axis=0, keepdims=True)                              # [1, H2]
    db3 = jnp.sum(dpred, axis=0, keepdims=True)                                   # [1, 1]

    dh2 = dpred * w3                                                              # [N, H2]
    dz2 = jnp.where(z2 > 0.0, dh2, 0.0)
    dw2 = lax.dot_general(dz2, h1, _C00, preferred_element_type=jnp.float32)      # [H2, H1]
    db2 = jnp.sum(dz2, axis=0, keepdims=True)                                     # [1, H2]

    dh1 = lax.dot_general(dz2, w2, _C10, preferred_element_type=jnp.float32)      # [N, H1]
    dz1 = jnp.where(z1 > 0.0, dh1, 0.0)
    dw1 = lax.dot_general(dz1, x, _C00, preferred_element_type=jnp.float32)       # [H1, Din]
    db1 = jnp.sum(dz1, axis=0, keepdims=True)                                     # [1, H1]

    # ---- SGD fast-weight update:  w <- w - local_lr * grad ----
    return (w1 - lr * dw1, b1 - lr * db1,
            w2 - lr * dw2, b2 - lr * db2,
            w3 - lr * dw3, b3 - lr * db3)


def maml_inner_loop_kernel(lr_ref,                       # SMEM scalar [1,1]
                           x_ref, y_ref,
                           w1_ref, b1_ref, w2_ref, b2_ref, w3_ref, b3_ref,
                           w1_o, b1_o, w2_o, b2_o, w3_o, b3_o,
                           *, local_update):
    """Fused MAML inner loop: `local_update` (fwd + bwd + SGD) steps in one kernel."""
    lr = lr_ref[0, 0]
    x = x_ref[...]                       # [N, Din]
    y = y_ref[...]                       # [N, 1]
    inv_n2 = jnp.float32(2.0 / x.shape[0])

    params = (w1_ref[...], b1_ref[...],
              w2_ref[...], b2_ref[...],
              w3_ref[...], b3_ref[...])

    # local_update is a small compile-time config constant -> static unroll keeps
    # the fast weights in vregs/VMEM across all steps (no HBM round-trips).
    for _ in range(local_update):
        params = _inner_step(x, y, params, lr, inv_n2)

    w1_o[...], b1_o[...], w2_o[...], b2_o[...], w3_o[...], b3_o[...] = params


def pallas_inner_loop(x, y, params, local_lr, local_update):
    vmem = pl.BlockSpec(memory_space=pltpu.MemorySpace.VMEM)
    smem = pl.BlockSpec(memory_space=pltpu.MemorySpace.SMEM)
    lr = jnp.asarray(local_lr, jnp.float32).reshape(1, 1)   # runtime scalar, no recompile per lr
    out_shape = tuple(jax.ShapeDtypeStruct(p.shape, p.dtype) for p in params)
    return pl.pallas_call(
        functools.partial(maml_inner_loop_kernel, local_update=local_update),
        out_shape=out_shape,
        in_specs=[smem] + [vmem] * (2 + len(params)),
        out_specs=tuple(vmem for _ in params),
    )(lr, x, y, *params)


def meta_cluster_forward(support_user_emb, support_item_emb, support_set_y,
                         support_mp_user_emb, vars_dict, local_lr, local_update):
    """Equivalent of MetaCluster.forward(): returns the fast_weights dict."""
    # TODO(synk): BaseRecommender source is not provided; following the MetaHIN
    # MetaLearner convention it consumes concat(item_emb, mp_enhanced_user_emb)
    # (support_user_emb is carried through the signature but unused by the MLP).
    del support_user_emb
    x = jnp.concatenate([support_item_emb, support_mp_user_emb], axis=1).astype(jnp.float32)
    y = support_set_y.reshape(-1, 1).astype(jnp.float32)
    params = tuple(vars_dict[k] for k in PARAM_NAMES)
    params = pallas_inner_loop(x, y, params, local_lr, local_update)
    return dict(zip(PARAM_NAMES, params))


# ---------------- pure-JAX reference (for correctness sanity check) ----------------
def _ref_inner_loop(x, y, params, local_lr, local_update):
    def loss_fn(ps):
        w1, b1, w2, b2, w3, b3 = ps
        h1 = jax.nn.relu(x @ w1.T + b1)
        h2 = jax.nn.relu(h1 @ w2.T + b2)
        pred = h2 @ w3.T + b3
        return jnp.mean((pred - y) ** 2)
    for _ in range(local_update):
        g = jax.grad(loss_fn)(params)
        params = tuple(p - local_lr * gp for p, gp in zip(params, g))
    return params


if __name__ == "__main__":
    key = jax.random.PRNGKey(0)
    N, EMB = 8, 32            # support-set size, embedding_dim
    H1, H2 = 64, 64           # first/second fc hidden dims
    DIN = 2 * EMB             # concat(item_emb, mp_enhanced_user_emb)
    LOCAL_LR = 5e-3
    LOCAL_UPDATE = 3          # config['local_update']

    ks = jax.random.split(key, 10)
    support_user_emb = jax.random.normal(ks[0], (N, EMB), jnp.float32)
    support_item_emb = jax.random.normal(ks[1], (N, EMB), jnp.float32)
    support_mp_user_emb = jax.random.normal(ks[2], (N, EMB), jnp.float32)
    support_set_y = jax.random.uniform(ks[3], (N,), jnp.float32, 1.0, 5.0)

    def init_linear(kw, kb, out_d, in_d):
        bound = 1.0 / (in_d ** 0.5)
        w = jax.random.uniform(kw, (out_d, in_d), jnp.float32, -bound, bound)
        b = jax.random.uniform(kb, (1, out_d), jnp.float32, -bound, bound)
        return w, b

    w1, b1 = init_linear(ks[4], ks[5], H1, DIN)
    w2, b2 = init_linear(ks[6], ks[7], H2, H1)
    w3, b3 = init_linear(ks[8], ks[9], 1, H2)
    vars_dict = dict(zip(PARAM_NAMES, (w1, b1, w2, b2, w3, b3)))

    fast_weights = meta_cluster_forward(
        support_user_emb, support_item_emb, support_set_y,
        support_mp_user_emb, vars_dict, LOCAL_LR, LOCAL_UPDATE)
    fast_weights = jax.tree_util.tree_map(jax.block_until_ready, fast_weights)

    # sanity: compare against jax.grad reference of the same inner loop
    x_ref = jnp.concatenate([support_item_emb, support_mp_user_emb], axis=1)
    y_ref = support_set_y.reshape(-1, 1)
    ref_params = _ref_inner_loop(
        x_ref, y_ref, tuple(vars_dict[k] for k in PARAM_NAMES), LOCAL_LR, LOCAL_UPDATE)
    for name, rp in zip(PARAM_NAMES, ref_params):
        assert jnp.allclose(fast_weights[name], rp, rtol=2e-3, atol=1e-5), name

    print("KERNEL_OK")
</pallas_src>

<mosaic_0001>
module attributes {stable_mosaic.version = 11 : i64} {
  func.func @maml_inner_loop_kernel(%arg0: memref<1x1xf32, #tpu.memory_space<smem>>, %arg1: memref<8x64xf32, #tpu.memory_space<vmem>>, %arg2: memref<8x1xf32, #tpu.memory_space<vmem>>, %arg3: memref<64x64xf32, #tpu.memory_space<vmem>>, %arg4: memref<1x64xf32, #tpu.memory_space<vmem>>, %arg5: memref<64x64xf32, #tpu.memory_space<vmem>>, %arg6: memref<1x64xf32, #tpu.memory_space<vmem>>, %arg7: memref<1x64xf32, #tpu.memory_space<vmem>>, %arg8: memref<1x1xf32, #tpu.memory_space<vmem>>, %arg9: memref<64x64xf32, #tpu.memory_space<vmem>>, %arg10: memref<1x64xf32, #tpu.memory_space<vmem>>, %arg11: memref<64x64xf32, #tpu.memory_space<vmem>>, %arg12: memref<1x64xf32, #tpu.memory_space<vmem>>, %arg13: memref<1x64xf32, #tpu.memory_space<vmem>>, %arg14: memref<1x1xf32, #tpu.memory_space<vmem>>) attributes {dimension_semantics = [], scalar_prefetch = 0 : i64, scratch_operands = 0 : i64, tpu.core_type = #tpu.core_type<tc>} {
    %c0 = arith.constant 0 : index
    %c0_0 = arith.constant 0 : index
    %0 = memref.load %arg0[%c0, %c0_0] : memref<1x1xf32, #tpu.memory_space<smem>>
    %c0_1 = arith.constant 0 : index
    %c0_2 = arith.constant 0 : index
    %1 = vector.load %arg1[%c0_1, %c0_2] : memref<8x64xf32, #tpu.memory_space<vmem>>, vector<8x64xf32>
    %c0_3 = arith.constant 0 : index
    %c0_4 = arith.constant 0 : index
    %2 = vector.load %arg2[%c0_3, %c0_4] : memref<8x1xf32, #tpu.memory_space<vmem>>, vector<8x1xf32>
    %c0_5 = arith.constant 0 : index
    %c0_6 = arith.constant 0 : index
    %3 = vector.load %arg3[%c0_5, %c0_6] : memref<64x64xf32, #tpu.memory_space<vmem>>, vector<64x64xf32>
    %c0_7 = arith.constant 0 : index
    %c0_8 = arith.constant 0 : index
    %4 = vector.load %arg4[%c0_7, %c0_8] : memref<1x64xf32, #tpu.memory_space<vmem>>, vector<1x64xf32>
    %c0_9 = arith.constant 0 : index
    %c0_10 = arith.constant 0 : index
    %5 = vector.load %arg5[%c0_9, %c0_10] : memref<64x64xf32, #tpu.memory_space<vmem>>, vector<64x64xf32>
    %c0_11 = arith.constant 0 : index
    %c0_12 = arith.constant 0 : index
    %6 = vector.load %arg6[%c0_11, %c0_12] : memref<1x64xf32, #tpu.memory_space<vmem>>, vector<1x64xf32>
    %c0_13 = arith.constant 0 : index
    %c0_14 = arith.constant 0 : index
    %7 = vector.load %arg7[%c0_13, %c0_14] : memref<1x64xf32, #tpu.memory_space<vmem>>, vector<1x64xf32>
    %c0_15 = arith.constant 0 : index
    %c0_16 = arith.constant 0 : index
    %8 = vector.load %arg8[%c0_15, %c0_16] : memref<1x1xf32, #tpu.memory_space<vmem>>, vector<1x1xf32>
    %cst = arith.constant dense<0.000000e+00> : vector<8x64xf32>
    %9 = tpu.matmul %1, %3, %cst {dimension_numbers = #tpu.dot_dimension_numbers<[1], [1], [0], [0], [0, 0, 1, 0], [], []>} : vector<8x64xf32>, vector<64x64xf32>, vector<8x64xf32> -> vector<8x64xf32>
    %10 = vector.broadcast %4 : vector<1x64xf32> to vector<8x64xf32>
    %11 = arith.addf %9, %10 : vector<8x64xf32>
    %cst_17 = arith.constant 0.000000e+00 : f32
    %12 = vector.broadcast %cst_17 : f32 to vector<8x64xf32>
    %13 = arith.maximumf %11, %12 : vector<8x64xf32>
    %cst_18 = arith.constant dense<0.000000e+00> : vector<8x64xf32>
    %14 = tpu.matmul %13, %5, %cst_18 {dimension_numbers = #tpu.dot_dimension_numbers<[1], [1], [0], [0], [0, 0, 1, 0], [], []>} : vector<8x64xf32>, vector<64x64xf32>, vector<8x64xf32> -> vector<8x64xf32>
    %15 = vector.broadcast %6 : vector<1x64xf32> to vector<8x64xf32>
    %16 = arith.addf %14, %15 : vector<8x64xf32>
    %cst_19 = arith.constant 0.000000e+00 : f32
    %17 = vector.broadcast %cst_19 : f32 to vector<8x64xf32>
    %18 = arith.maximumf %16, %17 : vector<8x64xf32>
    %19 = vector.broadcast %7 : vector<1x64xf32> to vector<8x64xf32>
    %20 = arith.mulf %18, %19 : vector<8x64xf32>
    %cst_20 = arith.constant dense<0.000000e+00> : vector<8xf32>
    %21 = vector.multi_reduction <add>, %20, %cst_20 [1] : vector<8x64xf32> to vector<8xf32>
    %22 = vector.shape_cast %21 : vector<8xf32> to vector<8x1xf32>
    %23 = vector.broadcast %8 : vector<1x1xf32> to vector<8x1xf32>
    %24 = arith.addf %22, %23 : vector<8x1xf32>
    %25 = arith.subf %24, %2 : vector<8x1xf32>
    %cst_21 = arith.constant 2.500000e-01 : f32
    %26 = vector.broadcast %cst_21 : f32 to vector<8x1xf32>
    %27 = arith.mulf %26, %25 : vector<8x1xf32>
    %28 = vector.broadcast %27 : vector<8x1xf32> to vector<8x64xf32>
    %29 = arith.mulf %28, %18 : vector<8x64xf32>
    %cst_22 = arith.constant dense<0.000000e+00> : vector<64xf32>
    %30 = vector.multi_reduction <add>, %29, %cst_22 [0] : vector<8x64xf32> to vector<64xf32>
    %31 = vector.shape_cast %30 : vector<64xf32> to vector<1x64xf32>
    %cst_23 = arith.constant dense<0.000000e+00> : vector<1xf32>
    %32 = vector.multi_reduction <add>, %27, %cst_23 [0] : vector<8x1xf32> to vector<1xf32>
    %33 = vector.shape_cast %32 : vector<1xf32> to vector<1x1xf32>
    %34 = vector.broadcast %27 : vector<8x1xf32> to vector<8x64xf32>
    %35 = vector.broadcast %7 : vector<1x64xf32> to vector<8x64xf32>
    %36 = arith.mulf %34, %35 : vector<8x64xf32>
    %cst_24 = arith.constant 0.000000e+00 : f32
    %37 = vector.broadcast %cst_24 : f32 to vector<8x64xf32>
    %38 = arith.cmpf ogt, %16, %37 : vector<8x64xf32>
    %cst_25 = arith.constant 0.000000e+00 : f32
    %39 = vector.broadcast %cst_25 : f32 to vector<8x64xf32>
    %40 = arith.select %38, %36, %39 : vector<8x64xi1>, vector<8x64xf32>
    %cst_26 = arith.constant dense<0.000000e+00> : vector<64x64xf32>
    %41 = tpu.matmul %40, %13, %cst_26 {dimension_numbers = #tpu.dot_dimension_numbers<[0], [0], [1], [1], [0, 1, 1, 1], [], []>} : vector<8x64xf32>, vector<8x64xf32>, vector<64x64xf32> -> vector<64x64xf32>
    %cst_27 = arith.constant dense<0.000000e+00> : vector<64xf32>
    %42 = vector.multi_reduction <add>, %40, %cst_27 [0] : vector<8x64xf32> to vector<64xf32>
    %43 = vector.shape_cast %42 : vector<64xf32> to vector<1x64xf32>
    %cst_28 = arith.constant dense<0.000000e+00> : vector<8x64xf32>
    %44 = tpu.matmul %40, %5, %cst_28 {dimension_numbers = #tpu.dot_dimension_numbers<[1], [0], [0], [1], [0, 0, 1, 1], [], []>} : vector<8x64xf32>, vector<64x64xf32>, vector<8x64xf32> -> vector<8x64xf32>
    %cst_29 = arith.constant 0.000000e+00 : f32
    %45 = vector.broadcast %cst_29 : f32 to vector<8x64xf32>
    %46 = arith.cmpf ogt, %11, %45 : vector<8x64xf32>
    %cst_30 = arith.constant 0.000000e+00 : f32
    %47 = vector.broadcast %cst_30 : f32 to vector<8x64xf32>
    %48 = arith.select %46, %44, %47 : vector<8x64xi1>, vector<8x64xf32>
    %cst_31 = arith.constant dense<0.000000e+00> : vector<64x64xf32>
    %49 = tpu.matmul %48, %1, %cst_31 {dimension_numbers = #tpu.dot_dimension_numbers<[0], [0], [1], [1], [0, 1, 1, 1], [], []>} : vector<8x64xf32>, vector<8x64xf32>, vector<64x64xf32> -> vector<64x64xf32>
    %cst_32 = arith.constant dense<0.000000e+00> : vector<64xf32>
    %50 = vector.multi_reduction <add>, %48, %cst_32 [0] : vector<8x64xf32> to vector<64xf32>
    %51 = vector.shape_cast %50 : vector<64xf32> to vector<1x64xf32>
    %52 = vector.broadcast %0 : f32 to vector<64x64xf32>
    %53 = arith.mulf %52, %49 : vector<64x64xf32>
    %54 = arith.subf %3, %53 : vector<64x64xf32>
    %55 = vector.broadcast %0 : f32 to vector<1x64xf32>
    %56 = arith.mulf %55, %51 : vector<1x64xf32>
    %57 = arith.subf %4, %56 : vector<1x64xf32>
    %58 = vector.broadcast %0 : f32 to vector<64x64xf32>
    %59 = arith.mulf %58, %41 : vector<64x64xf32>
    %60 = arith.subf %5, %59 : vector<64x64xf32>
    %61 = vector.broadcast %0 : f32 to vector<1x64xf32>
    %62 = arith.mulf %61, %43 : vector<1x64xf32>
    %63 = arith.subf %6, %62 : vector<1x64xf32>
    %64 = vector.broadcast %0 : f32 to vector<1x64xf32>
    %65 = arith.mulf %64, %31 : vector<1x64xf32>
    %66 = arith.subf %7, %65 : vector<1x64xf32>
    %67 = vector.broadcast %0 : f32 to vector<1x1xf32>
    %68 = arith.mulf %67, %33 : vector<1x1xf32>
    %69 = arith.subf %8, %68 : vector<1x1xf32>
    %cst_33 = arith.constant dense<0.000000e+00> : vector<8x64xf32>
    %70 = tpu.matmul %1, %54, %cst_33 {dimension_numbers = #tpu.dot_dimension_numbers<[1], [1], [0], [0], [0, 0, 1, 0], [], []>} : vector<8x64xf32>, vector<64x64xf32>, vector<8x64xf32> -> vector<8x64xf32>
    %71 = vector.broadcast %57 : vector<1x64xf32> to vector<8x64xf32>
    %72 = arith.addf %70, %71 : vector<8x64xf32>
    %cst_34 = arith.constant 0.000000e+00 : f32
    %73 = vector.broadcast %cst_34 : f32 to vector<8x64xf32>
    %74 = arith.maximumf %72, %73 : vector<8x64xf32>
    %cst_35 = arith.constant dense<0.000000e+00> : vector<8x64xf32>
    %75 = tpu.matmul %74, %60, %cst_35 {dimension_numbers = #tpu.dot_dimension_numbers<[1], [1], [0], [0], [0, 0, 1, 0], [], []>} : vector<8x64xf32>, vector<64x64xf32>, vector<8x64xf32> -> vector<8x64xf32>
    %76 = vector.broadcast %63 : vector<1x64xf32> to vector<8x64xf32>
    %77 = arith.addf %75, %76 : vector<8x64xf32>
    %cst_36 = arith.constant 0.000000e+00 : f32
    %78 = vector.broadcast %cst_36 : f32 to vector<8x64xf32>
    %79 = arith.maximumf %77, %78 : vector<8x64xf32>
    %80 = vector.broadcast %66 : vector<1x64xf32> to vector<8x64xf32>
    %81 = arith.mulf %79, %80 : vector<8x64xf32>
    %cst_37 = arith.constant dense<0.000000e+00> : vector<8xf32>
    %82 = vector.multi_reduction <add>, %81, %cst_37 [1] : vector<8x64xf32> to vector<8xf32>
    %83 = vector.shape_cast %82 : vector<8xf32> to vector<8x1xf32>
    %84 = vector.broadcast %69 : vector<1x1xf32> to vector<8x1xf32>
    %85 = arith.addf %83, %84 : vector<8x1xf32>
    %86 = arith.subf %85, %2 : vector<8x1xf32>
    %cst_38 = arith.constant 2.500000e-01 : f32
    %87 = vector.broadcast %cst_38 : f32 to vector<8x1xf32>
    %88 = arith.mulf %87, %86 : vector<8x1xf32>
    %89 = vector.broadcast %88 : vector<8x1xf32> to vector<8x64xf32>
    %90 = arith.mulf %89, %79 : vector<8x64xf32>
    %cst_39 = arith.constant dense<0.000000e+00> : vector<64xf32>
    %91 = vector.multi_reduction <add>, %90, %cst_39 [0] : vector<8x64xf32> to vector<64xf32>
    %92 = vector.shape_cast %91 : vector<64xf32> to vector<1x64xf32>
    %cst_40 = arith.constant dense<0.000000e+00> : vector<1xf32>
    %93 = vector.multi_reduction <add>, %88, %cst_40 [0] : vector<8x1xf32> to vector<1xf32>
    %94 = vector.shape_cast %93 : vector<1xf32> to vector<1x1xf32>
    %95 = vector.broadcast %88 : vector<8x1xf32> to vector<8x64xf32>
    %96 = vector.broadcast %66 : vector<1x64xf32> to vector<8x64xf32>
    %97 = arith.mulf %95, %96 : vector<8x64xf32>
    %cst_41 = arith.constant 0.000000e+00 : f32
    %98 = vector.broadcast %cst_41 : f32 to vector<8x64xf32>
    %99 = arith.cmpf ogt, %77, %98 : vector<8x64xf32>
    %cst_42 = arith.constant 0.000000e+00 : f32
    %100 = vector.broadcast %cst_42 : f32 to vector<8x64xf32>
    %101 = arith.select %99, %97, %100 : vector<8x64xi1>, vector<8x64xf32>
    %cst_43 = arith.constant dense<0.000000e+00> : vector<64x64xf32>
    %102 = tpu.matmul %101, %74, %cst_43 {dimension_numbers = #tpu.dot_dimension_numbers<[0], [0], [1], [1], [0, 1, 1, 1], [], []>} : vector<8x64xf32>, vector<8x64xf32>, vector<64x64xf32> -> vector<64x64xf32>
    %cst_44 = arith.constant dense<0.000000e+00> : vector<64xf32>
    %103 = vector.multi_reduction <add>, %101, %cst_44 [0] : vector<8x64xf32> to vector<64xf32>
    %104 = vector.shape_cast %103 : vector<64xf32> to vector<1x64xf32>
    %cst_45 = arith.constant dense<0.000000e+00> : vector<8x64xf32>
    %105 = tpu.matmul %101, %60, %cst_45 {dimension_numbers = #tpu.dot_dimension_numbers<[1], [0], [0], [1], [0, 0, 1, 1], [], []>} : vector<8x64xf32>, vector<64x64xf32>, vector<8x64xf32> -> vector<8x64xf32>
    %cst_46 = arith.constant 0.000000e+00 : f32
    %106 = vector.broadcast %cst_46 : f32 to vector<8x64xf32>
    %107 = arith.cmpf ogt, %72, %106 : vector<8x64xf32>
    %cst_47 = arith.constant 0.000000e+00 : f32
    %108 = vector.broadcast %cst_47 : f32 to vector<8x64xf32>
    %109 = arith.select %107, %105, %108 : vector<8x64xi1>, vector<8x64xf32>
    %cst_48 = arith.constant dense<0.000000e+00> : vector<64x64xf32>
    %110 = tpu.matmul %109, %1, %cst_48 {dimension_numbers = #tpu.dot_dimension_numbers<[0], [0], [1], [1], [0, 1, 1, 1], [], []>} : vector<8x64xf32>, vector<8x64xf32>, vector<64x64xf32> -> vector<64x64xf32>
    %cst_49 = arith.constant dense<0.000000e+00> : vector<64xf32>
    %111 = vector.multi_reduction <add>, %109, %cst_49 [0] : vector<8x64xf32> to vector<64xf32>
    %112 = vector.shape_cast %111 : vector<64xf32> to vector<1x64xf32>
    %113 = vector.broadcast %0 : f32 to vector<64x64xf32>
    %114 = arith.mulf %113, %110 : vector<64x64xf32>
    %115 = arith.subf %54, %114 : vector<64x64xf32>
    %116 = vector.broadcast %0 : f32 to vector<1x64xf32>
    %117 = arith.mulf %116, %112 : vector<1x64xf32>
    %118 = arith.subf %57, %117 : vector<1x64xf32>
    %119 = vector.broadcast %0 : f32 to vector<64x64xf32>
    %120 = arith.mulf %119, %102 : vector<64x64xf32>
    %121 = arith.subf %60, %120 : vector<64x64xf32>
    %122 = vector.broadcast %0 : f32 to vector<1x64xf32>
    %123 = arith.mulf %122, %104 : vector<1x64xf32>
    %124 = arith.subf %63, %123 : vector<1x64xf32>
    %125 = vector.broadcast %0 : f32 to vector<1x64xf32>
    %126 = arith.mulf %125, %92 : vector<1x64xf32>
    %127 = arith.subf %66, %126 : vector<1x64xf32>
    %128 = vector.broadcast %0 : f32 to vector<1x1xf32>
    %129 = arith.mulf %128, %94 : vector<1x1xf32>
    %130 = arith.subf %69, %129 : vector<1x1xf32>
    %cst_50 = arith.constant dense<0.000000e+00> : vector<8x64xf32>
    %131 = tpu.matmul %1, %115, %cst_50 {dimension_numbers = #tpu.dot_dimension_numbers<[1], [1], [0], [0], [0, 0, 1, 0], [], []>} : vector<8x64xf32>, vector<64x64xf32>, vector<8x64xf32> -> vector<8x64xf32>
    %132 = vector.broadcast %118 : vector<1x64xf32> to vector<8x64xf32>
    %133 = arith.addf %131, %132 : vector<8x64xf32>
    %cst_51 = arith.constant 0.000000e+00 : f32
    %134 = vector.broadcast %cst_51 : f32 to vector<8x64xf32>
    %135 = arith.maximumf %133, %134 : vector<8x64xf32>
    %cst_52 = arith.constant dense<0.000000e+00> : vector<8x64xf32>
    %136 = tpu.matmul %135, %121, %cst_52 {dimension_numbers = #tpu.dot_dimension_numbers<[1], [1], [0], [0], [0, 0, 1, 0], [], []>} : vector<8x64xf32>, vector<64x64xf32>, vector<8x64xf32> -> vector<8x64xf32>
    %137 = vector.broadcast %124 : vector<1x64xf32> to vector<8x64xf32>
    %138 = arith.addf %136, %137 : vector<8x64xf32>
    %cst_53 = arith.constant 0.000000e+00 : f32
    %139 = vector.broadcast %cst_53 : f32 to vector<8x64xf32>
    %140 = arith.maximumf %138, %139 : vector<8x64xf32>
    %141 = vector.broadcast %127 : vector<1x64xf32> to vector<8x64xf32>
    %142 = arith.mulf %140, %141 : vector<8x64xf32>
    %cst_54 = arith.constant dense<0.000000e+00> : vector<8xf32>
    %143 = vector.multi_reduction <add>, %142, %cst_54 [1] : vector<8x64xf32> to vector<8xf32>
    %144 = vector.shape_cast %143 : vector<8xf32> to vector<8x1xf32>
    %145 = vector.broadcast %130 : vector<1x1xf32> to vector<8x1xf32>
    %146 = arith.addf %144, %145 : vector<8x1xf32>
    %147 = arith.subf %146, %2 : vector<8x1xf32>
    %cst_55 = arith.constant 2.500000e-01 : f32
    %148 = vector.broadcast %cst_55 : f32 to vector<8x1xf32>
    %149 = arith.mulf %148, %147 : vector<8x1xf32>
    %150 = vector.broadcast %149 : vector<8x1xf32> to vector<8x64xf32>
    %151 = arith.mulf %150, %140 : vector<8x64xf32>
    %cst_56 = arith.constant dense<0.000000e+00> : vector<64xf32>
    %152 = vector.multi_reduction <add>, %151, %cst_56 [0] : vector<8x64xf32> to vector<64xf32>
    %153 = vector.shape_cast %152 : vector<64xf32> to vector<1x64xf32>
    %cst_57 = arith.constant dense<0.000000e+00> : vector<1xf32>
    %154 = vector.multi_reduction <add>, %149, %cst_57 [0] : vector<8x1xf32> to vector<1xf32>
    %155 = vector.shape_cast %154 : vector<1xf32> to vector<1x1xf32>
    %156 = vector.broadcast %149 : vector<8x1xf32> to vector<8x64xf32>
    %157 = vector.broadcast %127 : vector<1x64xf32> to vector<8x64xf32>
    %158 = arith.mulf %156, %157 : vector<8x64xf32>
    %cst_58 = arith.constant 0.000000e+00 : f32
    %159 = vector.broadcast %cst_58 : f32 to vector<8x64xf32>
    %160 = arith.cmpf ogt, %138, %159 : vector<8x64xf32>
    %cst_59 = arith.constant 0.000000e+00 : f32
    %161 = vector.broadcast %cst_59 : f32 to vector<8x64xf32>
    %162 = arith.select %160, %158, %161 : vector<8x64xi1>, vector<8x64xf32>
    %cst_60 = arith.constant dense<0.000000e+00> : vector<64x64xf32>
    %163 = tpu.matmul %162, %135, %cst_60 {dimension_numbers = #tpu.dot_dimension_numbers<[0], [0], [1], [1], [0, 1, 1, 1], [], []>} : vector<8x64xf32>, vector<8x64xf32>, vector<64x64xf32> -> vector<64x64xf32>
    %cst_61 = arith.constant dense<0.000000e+00> : vector<64xf32>
    %164 = vector.multi_reduction <add>, %162, %cst_61 [0] : vector<8x64xf32> to vector<64xf32>
    %165 = vector.shape_cast %164 : vector<64xf32> to vector<1x64xf32>
    %cst_62 = arith.constant dense<0.000000e+00> : vector<8x64xf32>
    %166 = tpu.matmul %162, %121, %cst_62 {dimension_numbers = #tpu.dot_dimension_numbers<[1], [0], [0], [1], [0, 0, 1, 1], [], []>} : vector<8x64xf32>, vector<64x64xf32>, vector<8x64xf32> -> vector<8x64xf32>
    %cst_63 = arith.constant 0.000000e+00 : f32
    %167 = vector.broadcast %cst_63 : f32 to vector<8x64xf32>
    %168 = arith.cmpf ogt, %133, %167 : vector<8x64xf32>
    %cst_64 = arith.constant 0.000000e+00 : f32
    %169 = vector.broadcast %cst_64 : f32 to vector<8x64xf32>
    %170 = arith.select %168, %166, %169 : vector<8x64xi1>, vector<8x64xf32>
    %cst_65 = arith.constant dense<0.000000e+00> : vector<64x64xf32>
    %171 = tpu.matmul %170, %1, %cst_65 {dimension_numbers = #tpu.dot_dimension_numbers<[0], [0], [1], [1], [0, 1, 1, 1], [], []>} : vector<8x64xf32>, vector<8x64xf32>, vector<64x64xf32> -> vector<64x64xf32>
    %cst_66 = arith.constant dense<0.000000e+00> : vector<64xf32>
    %172 = vector.multi_reduction <add>, %170, %cst_66 [0] : vector<8x64xf32> to vector<64xf32>
    %173 = vector.shape_cast %172 : vector<64xf32> to vector<1x64xf32>
    %174 = vector.broadcast %0 : f32 to vector<64x64xf32>
    %175 = arith.mulf %174, %171 : vector<64x64xf32>
    %176 = arith.subf %115, %175 : vector<64x64xf32>
    %177 = vector.broadcast %0 : f32 to vector<1x64xf32>
    %178 = arith.mulf %177, %173 : vector<1x64xf32>
    %179 = arith.subf %118, %178 : vector<1x64xf32>
    %180 = vector.broadcast %0 : f32 to vector<64x64xf32>
    %181 = arith.mulf %180, %163 : vector<64x64xf32>
    %182 = arith.subf %121, %181 : vector<64x64xf32>
    %183 = vector.broadcast %0 : f32 to vector<1x64xf32>
    %184 = arith.mulf %183, %165 : vector<1x64xf32>
    %185 = arith.subf %124, %184 : vector<1x64xf32>
    %186 = vector.broadcast %0 : f32 to vector<1x64xf32>
    %187 = arith.mulf %186, %153 : vector<1x64xf32>
    %188 = arith.subf %127, %187 : vector<1x64xf32>
    %189 = vector.broadcast %0 : f32 to vector<1x1xf32>
    %190 = arith.mulf %189, %155 : vector<1x1xf32>
    %191 = arith.subf %130, %190 : vector<1x1xf32>
    %c0_67 = arith.constant 0 : index
    %c0_68 = arith.constant 0 : index
    %192 = vector.load %arg9[%c0_67, %c0_68] : memref<64x64xf32, #tpu.memory_space<vmem>>, vector<64x64xf32>
    tpu.vector_store %arg9[%c0_67, %c0_68], %176 {strides = array<i32>} : memref<64x64xf32, #tpu.memory_space<vmem>>, vector<64x64xf32>,
    %c0_69 = arith.constant 0 : index
    %c0_70 = arith.constant 0 : index
    %193 = vector.load %arg10[%c0_69, %c0_70] : memref<1x64xf32, #tpu.memory_space<vmem>>, vector<1x64xf32>
    tpu.vector_store %arg10[%c0_69, %c0_70], %179 {strides = array<i32>} : memref<1x64xf32, #tpu.memory_space<vmem>>, vector<1x64xf32>,
    %c0_71 = arith.constant 0 : index
    %c0_72 = arith.constant 0 : index
    %194 = vector.load %arg11[%c0_71, %c0_72] : memref<64x64xf32, #tpu.memory_space<vmem>>, vector<64x64xf32>
    tpu.vector_store %arg11[%c0_71, %c0_72], %182 {strides = array<i32>} : memref<64x64xf32, #tpu.memory_space<vmem>>, vector<64x64xf32>,
    %c0_73 = arith.constant 0 : index
    %c0_74 = arith.constant 0 : index
    %195 = vector.load %arg12[%c0_73, %c0_74] : memref<1x64xf32, #tpu.memory_space<vmem>>, vector<1x64xf32>
    tpu.vector_store %arg12[%c0_73, %c0_74], %185 {strides = array<i32>} : memref<1x64xf32, #tpu.memory_space<vmem>>, vector<1x64xf32>,
    %c0_75 = arith.constant 0 : index
    %c0_76 = arith.constant 0 : index
    %196 = vector.load %arg13[%c0_75, %c0_76] : memref<1x64xf32, #tpu.memory_space<vmem>>, vector<1x64xf32>
    tpu.vector_store %arg13[%c0_75, %c0_76], %188 {strides = array<i32>} : memref<1x64xf32, #tpu.memory_space<vmem>>, vector<1x64xf32>,
    %c0_77 = arith.constant 0 : index
    %c0_78 = arith.constant 0 : index
    %197 = vector.load %arg14[%c0_77, %c0_78] : memref<1x1xf32, #tpu.memory_space<vmem>>, vector<1x1xf32>
    tpu.vector_store %arg14[%c0_77, %c0_78], %191 {strides = array<i32>} : memref<1x1xf32, #tpu.memory_space<vmem>>, vector<1x1xf32>,
    return
  }
}

</mosaic_0001>

<bundles_post_ra>
// kernel: tpu_custom_call.1
= control target key start
LH: loop header
LB: loop body
LE: loop exit
PB: predicated region body
PF: predicated region fallthrough
CT: control target
= control target key end

     0   :  { %s3778_s0 = inlined_call_operand.<no memory space> [shape: f32[1,1], index: 0, kind: input, shape index: {}]   ;;  %s3779_s1 = inlined_call_operand.vmem [shape: f32[8,64], index: 1, kind: input, shape index: {}]   ;;  %s3780_s2 = inlined_call_operand.vmem [shape: f32[8,1], index: 2, kind: input, shape index: {}]   ;;  %s3781_s3 = inlined_call_operand.hbm [shape: f32[64,64], index: 3, kind: input, shape index: {}]   ;;  %s3782_s4 = inlined_call_operand.vmem [shape: f32[1,64], index: 4, kind: input, shape index: {}]   ;;  %s3783_s5 = inlined_call_operand.hbm [shape: f32[64,64], index: 5, kind: input, shape index: {}]   ;;  %s3784_s6 = inlined_call_operand.vmem [shape: f32[1,64], index: 6, kind: input, shape index: {}]   ;;  %s3785_s7 = inlined_call_operand.vmem [shape: f32[1,64], index: 7, kind: input, shape index: {}]   ;;  %s3786_s8 = inlined_call_operand.<no memory space> [shape: f32[1,1], index: 8, kind: input, shape index: {}]   ;;  %s3787_s9 = inlined_call_operand.hbm [shape: f32[64,64], index: 9, kind: output, shape index: {0}]   ;;  %s3788_s10 = inlined_call_operand.hbm [shape: f32[1,64], index: 10, kind: output, shape index: {1}]   ;;  %s3789_s11 = inlined_call_operand.hbm [shape: f32[64,64], index: 11, kind: output, shape index: {2}]   ;;  %s3790_s12 = inlined_call_operand.hbm [shape: f32[1,64], index: 12, kind: output, shape index: {3}]   ;;  %s3791_s13 = inlined_call_operand.hbm [shape: f32[1,64], index: 13, kind: output, shape index: {4}]   ;;  %s3792_s14 = inlined_call_operand.hbm [shape: f32[1,1], index: 14, kind: output, shape index: {5}]  }
   0x1   :  { %v21_v0 = vstv %s3786_s8 }
   0x2   :  { %22 = vst [vmem:[#allocation3] sm:$0x1] %v21_v0 }
   0x3   :  { %23 = vsyncpa [#allocation5], 0 }
   0x4   :  { %24 = vsyncpa [#allocation8], 0 }
   0x5   :  { %25 = vsyncpa [#allocation6], 0 }
   0x6   :  { %26 = vsyncpa [#allocation11], 0 }
   0x7   :  { %27 = vsyncpa [#allocation14], 0 }
   0x8   :  { %28 = vsyncpa [#allocation17], 0  ;;  %s2990_s15 = smov [#allocation4]  }
   0x9   :  { %s40_s16 = sshll.u32 %s2990_s15, 4  ;;  %s41_s16 = int_to_ptr.vmem [resolvable:$true] %s40_s16 }
   0xa   :  { %s2826_s17 = scalar_lea.vmem %s41_s16, 1024  ;;  %p2831_p1 = scmp.lt.s32.totalorder %s41_s16, %s41_s16 }
   0xb   :  { %p2827_p0 = scmp.ne.s32.totalorder %s41_s16, %s2826_s17  ;;  %p2832_p2 = scmp.lt.s32.totalorder %s2826_s17, %s2826_s17 }
   0xd   :  { %p2833_p3 = por %p2832_p2, %p2831_p1 }
   0xf   :  { %p2834_p4 = pnand %p2833_p3, %p2827_p0 }
  0x11   :  { %2837 = shalt.err (!%p2834_p4)
}
  0x12   :  { %s2991_s18 = smov 128   ;;  %s2992_s19 = smov 8  }
  0x13   :  { %46 = dma.hbm_to_vmem [thread:$0]  %s3781_s3, 1024, %s41_s16, [#allocation5], %s2991_s18, %s2991_s18, %s2992_s19  }
  0x14   :  { %s2993_s21 = smov [#allocation7]  }
  0x15   :  { %s54_s22 = sshll.u32 %s2993_s21, 4  ;;  %s55_s22 = int_to_ptr.vmem [resolvable:$true] %s54_s22 }
  0x16   :  { %s2846_s23 = scalar_lea.vmem %s55_s22, 1024  ;;  %p2851_p6 = scmp.lt.s32.totalorder %s55_s22, %s55_s22 }
  0x17   :  { %p2847_p5 = scmp.ne.s32.totalorder %s55_s22, %s2846_s23  ;;  %p2852_p7 = scmp.lt.s32.totalorder %s2846_s23, %s2846_s23 }
  0x19   :  { %p2853_p8 = por %p2852_p7, %p2851_p6 }
  0x1b   :  { %p2854_p9 = pnand %p2853_p8, %p2847_p5 }
  0x1d   :  { %2857 = shalt.err (!%p2854_p9)
}
  0x1e   :  { %60 = dma.hbm_to_vmem [thread:$0]  %s3783_s5, 1024, %s55_s22, [#allocation8], %s2991_s18, %s2991_s18, %s2992_s19  }
  0x1f   :  { %2978 = dma.done.wait [#allocation5], 1024  }
  0x20   :  { %2979 = vsyncadd [#allocation5], 4294966272 }
  0x21   :  { %2980 = dma.done.wait [#allocation8], 1024  }
  0x22   :  { %2981 = vsyncadd [#allocation8], 4294966272  ;;  %v2994_v1 = vmov 0.0   ;;  %vm2995_vm0 = vmmov 0   ;;  %vm102_vm1 = vcmask 523264   ;;  %v3099_v2 = vld [vmem:[#allocation4 + $0x38] sm:$0xff]  ;;  %v97_v19 = vlaneseq }
  0x23   :  { %2547 = vmatprep.subr.mxu0 %v2994_v1  ;;  %2563 = vmatprep.mubr.msk.f32.mxu0 %vm2995_vm0, %v2994_v1  ;;  %v3104_v3 = vld [vmem:[#allocation4 + $0x30] sm:$0xff]  ;;  %v3106_v4 = vld [vmem:[#allocation7 + $0x38] sm:$0xff]  ;;  %v3116_v6 = vld [vmem:[#allocation4 + $0x28] sm:$0xff]  ;;  %v2996_v38 = vmov 0   ;;  %vm380_vm3 = vcmask 64512   ;;  %vm337_vm5 = vcmask 7168  }
  0x24   :  { %2566 = vmatprep.subr.mxu1 %v2994_v1  ;;  %2582 = vmatprep.mubr.msk.f32.mxu1 %vm2995_vm0, %v2994_v1  ;;  %v3113_v5 = vld [vmem:[#allocation7 + $0x30] sm:$0xff]  ;;  %v3123_v7 = vld [vmem:[#allocation7 + $0x28] sm:$0xff]  ;;  %v3126_v8 = vld [vmem:[#allocation4 + $0x20] sm:$0xff]  ;;  %v98_v20 = vshrl.u32 %v97_v19, 7  ;;  %vm2217_vm8 = vcmask 0   ;;  %vm2205_vm10 = vcmask 516096  }
  0x25   :  { %2548 = vmatpush3.xpose.msk.msra.mxu0 %vm102_vm1, %v3099_v2  ;;  %2567 = vmatpush3.xpose.msk.msra.mxu1 %vm102_vm1, %v3106_v4  ;;  %v3133_v9 = vld [vmem:[#allocation7 + $0x20] sm:$0xff]  ;;  %v3136_v10 = vld [vmem:[#allocation4 + $0x18] sm:$0xff]  ;;  %v3146_v12 = vld [vmem:[#allocation4 + $0x10] sm:$0xff]  ;;  %s2998_s8 = smov [#allocation13]  }
  0x26   :  { %2549 = vmatprep.subr.mxu0 %v2994_v1  ;;  %2568 = vmatprep.subr.mxu1 %v2994_v1  ;;  %v3143_v11 = vld [vmem:[#allocation7 + $0x18] sm:$0xff]  ;;  %v3153_v13 = vld [vmem:[#allocation7 + $0x10] sm:$0xff]  ;;  %v3156_v14 = vld [vmem:[#allocation4 + $0x8] sm:$0xff]  ;;  %v3187_v21 = vsub.s32 0, %v98_v20  ;;  %s2259_s20 = sshll.u32 %s2998_s8, 4  ;;  %s2260_s20 = int_to_ptr.vmem [resolvable:$true] %s2259_s20 }
  0x27   :  { %v3163_v15 = vld [vmem:[#allocation7 + $0x8] sm:$0xff]  ;;  %v3166_v16 = vld [vmem:[#allocation4] sm:$0xff]  ;;  %v3192_v22 = vld [vmem:[%s3782_s4] sm:$0x1]  ;;  %2815 = vset.pattern.permute.xlu0 %v2996_v38 }
  0x28   :  { %v3175_v17 = vld [vmem:[%s3779_s1] sm:$0xff]  ;;  %v100_v23 = vrot.slane %v3192_v22, %v3187_v21 }
  0x29   :  { %2550 = vmatpush3.xpose.msk.msra.mxu0 %vm102_vm1, %v3104_v3  ;;  %2569 = vmatpush3.xpose.msk.msra.mxu1 %vm102_vm1, %v3113_v5  ;;  %v3183_v18 = vld [vmem:[#allocation7] sm:$0xff]  ;;  %v3204_v28 = vld [vmem:[%s3784_s6] sm:$0x1] }
  0x2a   :  { %2551 = vmatprep.subr.mxu0 %v2994_v1  ;;  %2570 = vmatprep.subr.mxu1 %v2994_v1  ;;  %v205_v29 = vrot.slane %v3204_v28, %v3187_v21  ;;  %v3211_v30 = vld [vmem:[%s3785_s7] sm:$0x1] }
  0x2b   :  { %v309_v33 = vrot.slane %v3211_v30, %v3187_v21  ;;  %v3222_v39 = vld [vmem:[#allocation3] sm:$0x1] }
  0x2c   :  { %v319_v40 = vrot.slane %v3222_v39, %v3187_v21  ;;  %v3229_v41 = vld [vmem:[%s3780_s2] sm:$0xff] }
  0x2d   :  { %2552 = vmatpush3.xpose.msk.msra.mxu0 %vm102_vm1, %v3116_v6  ;;  %2571 = vmatpush3.xpose.msk.msra.mxu1 %vm102_vm1, %v3123_v7 }
  0x2e   :  { %2553 = vmatprep.subr.mxu0 %v2994_v1  ;;  %2572 = vmatprep.subr.mxu1 %v2994_v1 }
  0x31   :  { %2554 = vmatpush3.xpose.msk.msra.mxu0 %vm102_vm1, %v3126_v8  ;;  %2573 = vmatpush3.xpose.msk.msra.mxu1 %vm102_vm1, %v3133_v9 }
  0x32   :  { %2555 = vmatprep.subr.mxu0 %v2994_v1  ;;  %2574 = vmatprep.subr.mxu1 %v2994_v1 }
  0x35   :  { %2556 = vmatpush3.xpose.msk.msra.mxu0 %vm102_vm1, %v3136_v10  ;;  %2575 = vmatpush3.xpose.msk.msra.mxu1 %vm102_vm1, %v3143_v11 }
  0x36   :  { %2557 = vmatprep.subr.mxu0 %v2994_v1  ;;  %2576 = vmatprep.subr.mxu1 %v2994_v1 }
  0x39   :  { %2558 = vmatpush3.xpose.msk.msra.mxu0 %vm102_vm1, %v3146_v12  ;;  %2577 = vmatpush3.xpose.msk.msra.mxu1 %vm102_vm1, %v3153_v13 }
  0x3a   :  { %2559 = vmatprep.subr.mxu0 %v2994_v1  ;;  %2578 = vmatprep.subr.mxu1 %v2994_v1 }
  0x3d   :  { %2560 = vmatpush3.xpose.msk.msra.mxu0 %vm102_vm1, %v3156_v14  ;;  %2579 = vmatpush3.xpose.msk.msra.mxu1 %vm102_vm1, %v3163_v15 }
  0x3e   :  { %2561 = vmatprep.subr.mxu0 %v2994_v1  ;;  %2580 = vmatprep.subr.mxu1 %v2994_v1 }
  0x41   :  { %2562 = vmatpush3.xpose.msk.msra.mxu0 %vm102_vm1, %v3166_v16  ;;  %2581 = vmatpush3.xpose.msk.msra.mxu1 %vm102_vm1, %v3183_v18 }
  0x42   :  { %2618 = vmatprep.subr.mxu0 %v3175_v17 }
  0x44   :  { %2564 = vmatmul.mubr.msk.f32.vlgmr.msra.gmra.mxu0 %vm102_vm1, %v3175_v17 }
  0x45   :  { %2619 = vmatpush3.msra.mxu0 %v3175_v17 }
  0x46   :  { %2651 = vmatprep.subr.mxu0 %v2994_v1 }
 0x104   :  { %v196_v24 = vpop.f32.mrf.mxu0 }
 0x105   :  { %v3196_v25 = vadd.f32 %v196_v24, %v100_v23  ;;  %v3280_v24 = vstv %s3778_s0 }
 0x106   :  { %v2565_v26 = vpop.f32.mrf.mxu0 }
 0x107   :  { %v200_v27 = vmax.f32 %v3196_v25, 0.0  ;;  %vm590_vm4 = vcmp.gt.f32.partialorder %v3196_v25, 0.0 }
 0x109   :  { %2583 = vmatmul.mubr.msk.f32.vlgmr.msra.gmra.mxu1 %vm102_vm1, %v200_v27  ;;  %2585 = vmatprep.subr.mxu1 %v200_v27 }
 0x10a   :  { %2586 = vmatpush3.msra.mxu1 %v200_v27 }
 0x10b   :  { %2599 = vmatprep.subr.mxu1 %v2994_v1 }
 0x1c9   :  { %v300_v31 = vpop.f32.mrf.mxu1 }
 0x1ca   :  { %v3213_v32 = vadd.f32 %v300_v31, %v205_v29 }
 0x1cb   :  { %v2584_v34 = vpop.f32.mrf.mxu1 }
 0x1cc   :  { %v304_v35 = vmax.f32 %v3213_v32, 0.0  ;;  %vm346_vm2 = vcmp.gt.f32.partialorder %v3213_v32, 0.0 }
 0x1ce   :  { %v311_v36 = vmul.f32 %v309_v33, %v304_v35 }
 0x1d0   :  { %v312_v37 = vsel %vm102_vm1, %v311_v36, 0.0 }
 0x1d1   :  { %313 = vadd.xlane.f32.xlu0 %v312_v37 }
 0x25a   :  { %v314_v42 = vpop.xlane.xlu0 %313 }
 0x25b   :  { %v321_v43 = vadd.f32 %v319_v40, %v314_v42 }
 0x25d   :  { %v322_v44 = vsub.f32 %v321_v43, %v3229_v41 }
 0x25f   :  { %v3232_v45 = vmul.f32 0.25, %v322_v44 }
 0x261   :  { %326 = vperm.xlu0 %2815, %v3232_v45  }
 0x2dc   :  { %v3235_v46 = vpop.permute.xlu0 %326 }
 0x2dd   :  { %v345_v47 = vmul.f32 %v3235_v46, %v309_v33 }
 0x2df   :  { %v3239_v48 = vsel %vm346_vm2, %v345_v47, 0.0 }
 0x2e0   :  { %348 = vxpose.xlu1.b32.start.end [1/1] (short) (narrow) %v3239_v48, 64 }
 0x35c   :  { %v364_v49 = vpop.trf.xlu1 }
 0x35d   :  { %2587 = vmatprep.mubr.msk.f32.mxu1 %vm380_vm3, %v364_v49 }
 0x360   :  { %v365_v50 = vpop.trf.xlu1 }
 0x361   :  { %2588 = vmatmul.mubr.msk.f32.vlgmr.msra.gmra.mxu1 %vm380_vm3, %v365_v50 }
 0x362   :  { %2600 = vmatpush3.msra.mxu1 %v3106_v4 }
 0x363   :  { %2601 = vmatprep.subr.mxu1 %v2994_v1 }
 0x364   :  { %v366_v51 = vpop.trf.xlu1  ;;  %2602 = vmatpush3.msra.mxu1 %v3113_v5 }
 0x365   :  { %2590 = vmatprep.mubr.msk.f32.mxu1 %vm380_vm3, %v366_v51  ;;  %2603 = vmatprep.subr.mxu1 %v2994_v1 }
 0x366   :  { %2604 = vmatpush3.msra.mxu1 %v3123_v7 }
 0x367   :  { %2605 = vmatprep.subr.mxu1 %v2994_v1 }
 0x368   :  { %v367_v52 = vpop.trf.xlu1  ;;  %2606 = vmatpush3.msra.mxu1 %v3133_v9 }
 0x369   :  { %2591 = vmatmul.mubr.msk.f32.gmra.mxu1 %vm380_vm3, %v367_v52  ;;  %2607 = vmatprep.subr.mxu1 %v2994_v1 }
 0x36a   :  { %2608 = vmatpush3.msra.mxu1 %v3143_v11 }
 0x36b   :  { %2609 = vmatprep.subr.mxu1 %v2994_v1 }
 0x36c   :  { %v368_v53 = vpop.trf.xlu1  ;;  %2610 = vmatpush3.msra.mxu1 %v3153_v13 }
 0x36d   :  { %2593 = vmatprep.mubr.msk.f32.mxu1 %vm380_vm3, %v368_v53  ;;  %2611 = vmatprep.subr.mxu1 %v2994_v1 }
 0x36e   :  { %2612 = vmatpush3.msra.mxu1 %v3163_v15 }
 0x36f   :  { %2613 = vmatprep.subr.mxu1 %v2994_v1 }
 0x370   :  { %v369_v54 = vpop.trf.xlu1  ;;  %2614 = vmatpush3.msra.mxu1 %v3183_v18 }
 0x371   :  { %2594 = vmatmul.mubr.msk.f32.gmra.mxu1 %vm380_vm3, %v369_v54  ;;  %2632 = vmatprep.subr.mxu1 %v2994_v1 }
 0x374   :  { %v370_v55 = vpop.trf.xlu1 }
 0x375   :  { %2596 = vmatprep.mubr.msk.f32.mxu1 %vm380_vm3, %v370_v55 }
 0x378   :  { %v371_v56 = vpop.trf.xlu1 }
 0x379   :  { %2597 = vmatmul.mubr.msk.f32.gmra.mxu1 %vm380_vm3, %v371_v56 }
 0x37a   :  { %2615 = vmatprep.mubr.msk.f32.mxu1 %vm2995_vm0, %v2994_v1 }
 0x37d   :  { %2616 = vmatmul.mubr.msk.f32.vlgmr.msra.gmra.mxu1 %vm102_vm1, %v3239_v48 }
 0x37e   :  { %2648 = vmatprep.mubr.msk.f32.mxu1 %vm2995_vm0, %v2994_v1 }
 0x421   :  { %v2589_v57 = vpop.f32.mrf.mxu1 }
 0x423   :  { %v471_v58 = vpop.f32.mrf.mxu1 }
 0x424   :  { %v779_v50 = vmul.f32 %v3280_v24, %v471_v58 }
 0x429   :  { %v2592_v59 = vpop.f32.mrf.mxu1 }
 0x42b   :  { %v481_v60 = vpop.f32.mrf.mxu1 }
 0x42c   :  { %v781_v43 = vmul.f32 %v3280_v24, %v481_v60 }
 0x42e   :  { %v3326_v47 = vsub.f32 %v3153_v13, %v781_v43  ;;  %v3343_v13 = vsub.f32 %v3183_v18, %v779_v50 }
 0x431   :  { %v2595_v61 = vpop.f32.mrf.mxu1 }
 0x432   :  { %v784_v33 = vmul.f32 %v2595_v61, %v3280_v24 }
 0x433   :  { %v491_v62 = vpop.f32.mrf.mxu1 }
 0x434   :  { %v783_v37 = vmul.f32 %v3280_v24, %v491_v62 }
 0x436   :  { %v3310_v40 = vsub.f32 %v3133_v9, %v783_v37  ;;  %v780_v9 = vmul.f32 %v2589_v57, %v3280_v24 }
 0x439   :  { %v2598_v63 = vpop.f32.mrf.mxu1 }
 0x43a   :  { %v786_v26 = vmul.f32 %v2598_v63, %v3280_v24 }
 0x43b   :  { %v501_v0 = vpop.f32.mrf.mxu1 }
 0x43c   :  { %v3285_v29 = vsub.f32 %v3106_v4, %v786_v26  ;;  %v785_v25 = vmul.f32 %v3280_v24, %v501_v0  ;;  %v3301_v4 = vsub.f32 %v3123_v7, %v784_v33 }
 0x43d   :  { %v586_v19 = vpop.f32.mrf.mxu1 }
 0x43e   :  { %v3273_v20 = vsel %vm590_vm4, %v586_v19, 0.0  ;;  %v3294_v34 = vsub.f32 %v3113_v5, %v785_v25  ;;  %v782_v5 = vmul.f32 %v2592_v59, %v3280_v24 }
 0x43f   :  { %592 = vxpose.xlu1.b32.start.end [1/1] (short) (narrow) %v3273_v20, 64  ;;  %v2617_v23 = vpop.f32.mrf.mxu1 }
 0x440   :  { %v3317_v7 = vsub.f32 %v3143_v11, %v782_v5  ;;  %v3333_v11 = vsub.f32 %v3163_v15, %v780_v9  ;;  %v510_v9 = vsel %vm102_vm1, %v3239_v48, 0.0 }
 0x45d   :  { %2816 = vset.pattern.permute.xlu1 %v2996_v38 }
 0x4bb   :  { %v608_v27 = vpop.trf.xlu1 }
 0x4bc   :  { %2620 = vmatprep.mubr.msk.f32.mxu0 %vm380_vm3, %v608_v27 }
 0x4bf   :  { %v609_v31 = vpop.trf.xlu1 }
 0x4c0   :  { %2621 = vmatmul.mubr.msk.f32.vlgmr.msra.gmra.mxu0 %vm380_vm3, %v609_v31 }
 0x4c1   :  { %2652 = vmatpush3.xpose.msk.msra.mxu0 %vm102_vm1, %v3285_v29 }
 0x4c2   :  { %2653 = vmatprep.subr.mxu0 %v2994_v1 }
 0x4c3   :  { %v610_v36 = vpop.trf.xlu1 }
 0x4c4   :  { %2623 = vmatprep.mubr.msk.f32.mxu0 %vm380_vm3, %v610_v36 }
 0x4c5   :  { %2654 = vmatpush3.xpose.msk.msra.mxu0 %vm102_vm1, %v3294_v34 }
 0x4c6   :  { %2655 = vmatprep.subr.mxu0 %v2994_v1 }
 0x4c7   :  { %v611_v38 = vpop.trf.xlu1 }
 0x4c8   :  { %2624 = vmatmul.mubr.msk.f32.gmra.mxu0 %vm380_vm3, %v611_v38 }
 0x4c9   :  { %2656 = vmatpush3.xpose.msk.msra.mxu0 %vm102_vm1, %v3301_v4 }
 0x4ca   :  { %2657 = vmatprep.subr.mxu0 %v2994_v1 }
 0x4cb   :  { %v612_v42 = vpop.trf.xlu1 }
 0x4cc   :  { %2626 = vmatprep.mubr.msk.f32.mxu0 %vm380_vm3, %v612_v42 }
 0x4cd   :  { %2658 = vmatpush3.xpose.msk.msra.mxu0 %vm102_vm1, %v3310_v40 }
 0x4ce   :  { %2659 = vmatprep.subr.mxu0 %v2994_v1 }
 0x4cf   :  { %v613_v44 = vpop.trf.xlu1 }
 0x4d0   :  { %2627 = vmatmul.mubr.msk.f32.gmra.mxu0 %vm380_vm3, %v613_v44 }
 0x4d1   :  { %2660 = vmatpush3.xpose.msk.msra.mxu0 %vm102_vm1, %v3317_v7 }
 0x4d2   :  { %2661 = vmatprep.subr.mxu0 %v2994_v1 }
 0x4d3   :  { %v614_v49 = vpop.trf.xlu1 }
 0x4d4   :  { %2629 = vmatprep.mubr.msk.f32.mxu0 %vm380_vm3, %v614_v49  ;;  %v511_v49 = vrot.slane %v510_v9, 4 }
 0x4d5   :  { %2662 = vmatpush3.xpose.msk.msra.mxu0 %vm102_vm1, %v3326_v47 }
 0x4d6   :  { %2663 = vmatprep.subr.mxu0 %v2994_v1 }
 0x4d7   :  { %v615_v51 = vpop.trf.xlu1 }
 0x4d8   :  { %2630 = vmatmul.mubr.msk.f32.gmra.mxu0 %vm380_vm3, %v615_v51 }
 0x4d9   :  { %2664 = vmatpush3.xpose.msk.msra.mxu0 %vm102_vm1, %v3333_v11  ;;  %2667 = vmatprep.mubr.msk.f32.mxu0 %vm2995_vm0, %v2994_v1 }
 0x4da   :  { %2665 = vmatprep.subr.mxu0 %v2994_v1 }
 0x4dd   :  { %2666 = vmatpush3.xpose.msk.msra.mxu0 %vm102_vm1, %v3343_v13 }
 0x4de   :  { %2684 = vmatprep.subr.mxu0 %v2994_v1 }
 0x580   :  { %v2622_v15 = vpop.f32.mrf.mxu0 }
 0x581   :  { %v762_v23 = vmul.f32 %v2622_v15, %v3280_v24  ;;  %v512_v15 = vadd.f32 %v511_v49, %v510_v9 }
 0x582   :  { %v714_v52 = vpop.f32.mrf.mxu0 }
 0x583   :  { %v761_v26 = vmul.f32 %v3280_v24, %v714_v52 }
 0x585   :  { %v3399_v27 = vsub.f32 %v3166_v16, %v761_v26 }
 0x588   :  { %v2625_v53 = vpop.f32.mrf.mxu0 }
 0x589   :  { %v764_v0 = vmul.f32 %v2625_v53, %v3280_v24  ;;  %v513_v53 = vrot.slane %v512_v15, 2 }
 0x58a   :  { %v724_v54 = vpop.f32.mrf.mxu0 }
 0x58b   :  { %v763_v19 = vmul.f32 %v3280_v24, %v724_v54 }
 0x590   :  { %v2628_v55 = vpop.f32.mrf.mxu0 }
 0x591   :  { %v766_v61 = vmul.f32 %v2628_v55, %v3280_v24  ;;  %v514_v55 = vadd.f32 %v513_v53, %v512_v15 }
 0x592   :  { %v734_v56 = vpop.f32.mrf.mxu0 }
 0x593   :  { %v765_v63 = vmul.f32 %v3280_v24, %v734_v56 }
 0x598   :  { %v2631_v57 = vpop.f32.mrf.mxu0 }
 0x599   :  { %v768_v58 = vmul.f32 %v2631_v57, %v3280_v24  ;;  %v515_v57 = vrot.slane %v514_v55, 1 }
 0x59a   :  { %v744_v59 = vpop.f32.mrf.mxu0 }
 0x59b   :  { %v3350_v60 = vsub.f32 %v3099_v2, %v768_v58  ;;  %v767_v18 = vmul.f32 %v3280_v24, %v744_v59  ;;  %v3364_v2 = vsub.f32 %v3116_v6, %v766_v61  ;;  %v3378_v6 = vsub.f32 %v3136_v10, %v764_v0 }
 0x59c   :  { %v3392_v10 = vsub.f32 %v3156_v14, %v762_v23  ;;  %v516_v59 = vadd.f32 %v515_v57, %v514_v55 }
 0x59d   :  { %2633 = vmatpush3.xpose.msk.msra.mxu1 %vm102_vm1, %v3350_v60  ;;  %v3358_v62 = vsub.f32 %v3104_v3, %v767_v18  ;;  %v3372_v3 = vsub.f32 %v3126_v8, %v765_v63  ;;  %v3386_v8 = vsub.f32 %v3146_v12, %v763_v19  ;;  %v753_v12 = vsel %vm102_vm1, %v3273_v20, 0.0 }
 0x59e   :  { %2634 = vmatprep.subr.mxu1 %v2994_v1  ;;  %v754_v14 = vrot.slane %v753_v12, 4  ;;  %v795_v32 = vmul.f32 %v3280_v24, %v516_v59 }
 0x5a0   :  { %v755_v25 = vadd.f32 %v754_v14, %v753_v12 }
 0x5a1   :  { %2635 = vmatpush3.xpose.msk.msra.mxu1 %vm102_vm1, %v3358_v62 }
 0x5a2   :  { %2636 = vmatprep.subr.mxu1 %v2994_v1  ;;  %v756_v31 = vrot.slane %v755_v25, 2 }
 0x5a4   :  { %v757_v33 = vadd.f32 %v756_v31, %v755_v25 }
 0x5a5   :  { %2637 = vmatpush3.xpose.msk.msra.mxu1 %vm102_vm1, %v3364_v2 }
 0x5a6   :  { %2638 = vmatprep.subr.mxu1 %v2994_v1  ;;  %v758_v36 = vrot.slane %v757_v33, 1 }
 0x5a8   :  { %v759_v37 = vadd.f32 %v758_v36, %v757_v33 }
 0x5a9   :  { %2639 = vmatpush3.xpose.msk.msra.mxu1 %vm102_vm1, %v3372_v3 }
 0x5aa   :  { %2640 = vmatprep.subr.mxu1 %v2994_v1  ;;  %v777_v38 = vmul.f32 %v3280_v24, %v759_v37 }
 0x5ac   :  { %v3409_v16 = vsub.f32 %v3192_v22, %v777_v38  ;;  %v329_v22 = vmul.f32 %v3235_v46, %v304_v35  ;;  %v3444_v35 = vsub.f32 %v3204_v28, %v795_v32 }
 0x5ad   :  { %2641 = vmatpush3.xpose.msk.msra.mxu1 %vm102_vm1, %v3378_v6 }
 0x5ae   :  { %2642 = vmatprep.subr.mxu1 %v2994_v1  ;;  %v805_v5 = vrot.slane %v3409_v16, %v3187_v21  ;;  %v330_v50 = vsel %vm102_vm1, %v329_v22, 0.0  ;;  %v906_v48 = vrot.slane %v3444_v35, %v3187_v21 }
 0x5af   :  { %v331_v51 = vrot.slane %v330_v50, 4 }
 0x5b1   :  { %2643 = vmatpush3.xpose.msk.msra.mxu1 %vm102_vm1, %v3386_v8  ;;  %v332_v52 = vadd.f32 %v331_v51, %v330_v50 }
 0x5b2   :  { %2644 = vmatprep.subr.mxu1 %v2994_v1 }
 0x5b3   :  { %v333_v54 = vrot.slane %v332_v52, 2 }
 0x5b5   :  { %2645 = vmatpush3.xpose.msk.msra.mxu1 %vm102_vm1, %v3392_v10  ;;  %v334_v56 = vadd.f32 %v333_v54, %v332_v52 }
 0x5b6   :  { %2646 = vmatprep.subr.mxu1 %v2994_v1 }
 0x5b7   :  { %v335_v58 = vrot.slane %v334_v56, 1 }
 0x5b9   :  { %2647 = vmatpush3.xpose.msk.msra.mxu1 %vm102_vm1, %v3399_v27  ;;  %v336_v18 = vadd.f32 %v335_v58, %v334_v56 }
 0x5bb   :  { %v797_v46 = vmul.f32 %v3280_v24, %v336_v18 }
 0x5bc   :  { %2649 = vmatmul.mubr.msk.f32.vlgmr.msra.gmra.mxu1 %vm102_vm1, %v3175_v17 }
 0x5bd   :  { %v3450_v61 = vsub.f32 %v3211_v30, %v797_v46  ;;  %v338_v30 = vsel %vm337_vm5, %v3232_v45, 0.0 }
 0x5be   :  { %v339_v14 = vrot.slane %v338_v30, 4 }
 0x5bf   :  { %v1010_v26 = vrot.slane %v3450_v61, %v3187_v21 }
 0x5c0   :  { %v340_v25 = vadd.f32 %v339_v14, %v338_v30 }
 0x5c2   :  { %v341_v31 = vrot.slane %v340_v25, 2 }
 0x5c4   :  { %v342_v33 = vadd.f32 %v341_v31, %v340_v25 }
 0x5c6   :  { %v343_v36 = vrot.slane %v342_v33, 1 }
 0x5c8   :  { %v344_v37 = vadd.f32 %v343_v36, %v342_v33 }
 0x5ca   :  { %v799_v38 = vmul.f32 %v3280_v24, %v344_v37 }
 0x67c   :  { %v897_v42 = vpop.f32.mrf.mxu1 }
 0x67d   :  { %v3413_v43 = vadd.f32 %v897_v42, %v805_v5  ;;  %v3464_v5 = vsub.f32 %v3222_v39, %v799_v38 }
 0x67e   :  { %v2650_v44 = vpop.f32.mrf.mxu1 }
 0x67f   :  { %v901_v20 = vmax.f32 %v3413_v43, 0.0  ;;  %v1020_v42 = vrot.slane %v3464_v5, %v3187_v21  ;;  %vm1289_vm7 = vcmp.gt.f32.partialorder %v3413_v43, 0.0 }
 0x681   :  { %2668 = vmatmul.mubr.msk.f32.vlgmr.msra.gmra.mxu0 %vm102_vm1, %v901_v20  ;;  %2670 = vmatprep.subr.mxu1 %v901_v20 }
 0x682   :  { %2685 = vmatpush3.msra.mxu0 %v3285_v29  ;;  %2671 = vmatpush3.msra.mxu1 %v901_v20 }
 0x683   :  { %2686 = vmatprep.subr.mxu0 %v2994_v1  ;;  %2700 = vmatprep.mubr.msk.f32.mxu0 %vm2995_vm0, %v2994_v1 }
 0x684   :  { %2687 = vmatpush3.msra.mxu0 %v3294_v34  ;;  %2703 = vmatprep.subr.mxu1 %v3175_v17 }
 0x685   :  { %2688 = vmatprep.subr.mxu0 %v2994_v1 }
 0x686   :  { %2689 = vmatpush3.msra.mxu0 %v3301_v4 }
 0x687   :  { %2690 = vmatprep.subr.mxu0 %v2994_v1 }
 0x688   :  { %2691 = vmatpush3.msra.mxu0 %v3310_v40 }
 0x689   :  { %2692 = vmatprep.subr.mxu0 %v2994_v1 }
 0x68a   :  { %2693 = vmatpush3.msra.mxu0 %v3317_v7 }
 0x68b   :  { %2694 = vmatprep.subr.mxu0 %v2994_v1 }
 0x68c   :  { %2695 = vmatpush3.msra.mxu0 %v3326_v47 }
 0x68d   :  { %2696 = vmatprep.subr.mxu0 %v2994_v1 }
 0x68e   :  { %2697 = vmatpush3.msra.mxu0 %v3333_v11 }
 0x68f   :  { %2698 = vmatprep.subr.mxu0 %v2994_v1 }
 0x690   :  { %2699 = vmatpush3.msra.mxu0 %v3343_v13 }
 0x691   :  { %2717 = vmatprep.subr.mxu0 %v2994_v1 }
 0x741   :  { %v1001_v63 = vpop.f32.mrf.mxu0 }
 0x742   :  { %v3452_v0 = vadd.f32 %v1001_v63, %v906_v48 }
 0x743   :  { %v2669_v19 = vpop.f32.mrf.mxu0 }
 0x744   :  { %v1005_v23 = vmax.f32 %v3452_v0, 0.0  ;;  %vm1046_vm6 = vcmp.gt.f32.partialorder %v3452_v0, 0.0 }
 0x746   :  { %v1012_v28 = vmul.f32 %v1010_v26, %v1005_v23 }
 0x748   :  { %v1013_v12 = vsel %vm102_vm1, %v1012_v28, 0.0 }
 0x749   :  { %1014 = vadd.xlane.f32.xlu1 %v1013_v12 }
 0x7d2   :  { %v1015_v44 = vpop.xlane.xlu1 %1014 }
 0x7d3   :  { %v1022_v20 = vadd.f32 %v1020_v42, %v1015_v44 }
 0x7d5   :  { %v1023_v22 = vsub.f32 %v1022_v20, %v3229_v41 }
 0x7d7   :  { %v3469_v9 = vmul.f32 0.25, %v1023_v22 }
 0x7d9   :  { %1027 = vperm.xlu0 %2815, %v3469_v9  }
 0x854   :  { %v3472_v45 = vpop.permute.xlu0 %1027 }
 0x855   :  { %v1045_v49 = vmul.f32 %v3472_v45, %v1010_v26 }
 0x857   :  { %v3476_v50 = vsel %vm1046_vm6, %v1045_v49, 0.0 }
 0x858   :  { %1048 = vxpose.xlu0.b32.start.end [1/1] (short) (narrow) %v3476_v50, 64  ;;  %2701 = vmatmul.mubr.msk.f32.vlgmr.msra.gmra.mxu0 %vm102_vm1, %v3476_v50 }
 0x859   :  { %2733 = vmatprep.mubr.msk.f32.mxu0 %vm2995_vm0, %v2994_v1 }
 0x8d4   :  { %v1064_v39 = vpop.trf.xlu0 }
 0x8d5   :  { %2672 = vmatprep.mubr.msk.f32.mxu1 %vm380_vm3, %v1064_v39 }
 0x8d8   :  { %v1065_v51 = vpop.trf.xlu0 }
 0x8d9   :  { %2673 = vmatmul.mubr.msk.f32.vlgmr.msra.gmra.mxu1 %vm380_vm3, %v1065_v51 }
 0x8da   :  { %2704 = vmatpush3.msra.mxu1 %v3175_v17 }
 0x8db   :  { %2736 = vmatprep.subr.mxu1 %v2994_v1 }
 0x8dc   :  { %v1066_v15 = vpop.trf.xlu0 }
 0x8dd   :  { %2675 = vmatprep.mubr.msk.f32.mxu1 %vm380_vm3, %v1066_v15 }
 0x8e0   :  { %v1067_v52 = vpop.trf.xlu0 }
 0x8e1   :  { %2676 = vmatmul.mubr.msk.f32.gmra.mxu1 %vm380_vm3, %v1067_v52 }
 0x8e4   :  { %v1068_v53 = vpop.trf.xlu0 }
 0x8e5   :  { %2678 = vmatprep.mubr.msk.f32.mxu1 %vm380_vm3, %v1068_v53 }
 0x8e8   :  { %v1069_v54 = vpop.trf.xlu0 }
 0x8e9   :  { %2679 = vmatmul.mubr.msk.f32.gmra.mxu1 %vm380_vm3, %v1069_v54 }
 0x8ec   :  { %v1070_v55 = vpop.trf.xlu0 }
 0x8ed   :  { %2681 = vmatprep.mubr.msk.f32.mxu1 %vm380_vm3, %v1070_v55 }
 0x8f0   :  { %v1071_v56 = vpop.trf.xlu0 }
 0x8f1   :  { %2682 = vmatmul.mubr.msk.f32.gmra.mxu1 %vm380_vm3, %v1071_v56 }
 0x918   :  { %v1285_v57 = vpop.f32.mrf.mxu0 }
 0x919   :  { %v3494_v58 = vsel %vm1289_vm7, %v1285_v57, 0.0 }
 0x91a   :  { %1291 = vxpose.xlu0.b32.start.end [1/1] (short) (narrow) %v3494_v58, 64  ;;  %v2702_v59 = vpop.f32.mrf.mxu0 }
 0x996   :  { %v1307_v18 = vpop.trf.xlu0 }
 0x997   :  { %2705 = vmatprep.mubr.msk.f32.mxu1 %vm380_vm3, %v1307_v18 }
 0x999   :  { %v2674_v48 = vpop.f32.mrf.mxu1 }
 0x99a   :  { %v1308_v32 = vpop.trf.xlu0  ;;  %v1478_v51 = vmul.f32 %v2674_v48, %v3280_v24 }
 0x99b   :  { %2706 = vmatmul.mubr.msk.f32.vlgmr.msra.gmra.mxu1 %vm380_vm3, %v1308_v32  ;;  %v1170_v19 = vpop.f32.mrf.mxu1 }
 0x99c   :  { %v1477_v15 = vmul.f32 %v1170_v19, %v3280_v24 }
 0x99e   :  { %v1309_v46 = vpop.trf.xlu0  ;;  %v3558_v52 = vsub.f32 %v3343_v13, %v1477_v15 }
 0x99f   :  { %2708 = vmatprep.mubr.msk.f32.mxu1 %vm380_vm3, %v1309_v46 }
 0x9a1   :  { %v2677_v43 = vpop.f32.mrf.mxu1 }
 0x9a2   :  { %v1310_v63 = vpop.trf.xlu0  ;;  %v1480_v49 = vmul.f32 %v2677_v43, %v3280_v24 }
 0x9a3   :  { %2709 = vmatmul.mubr.msk.f32.gmra.mxu1 %vm380_vm3, %v1310_v63  ;;  %v1180_v28 = vpop.f32.mrf.mxu1 }
 0x9a4   :  { %v1479_v39 = vmul.f32 %v1180_v28, %v3280_v24 }
 0x9a6   :  { %v1311_v26 = vpop.trf.xlu0 }
 0x9a7   :  { %2711 = vmatprep.mubr.msk.f32.mxu1 %vm380_vm3, %v1311_v26 }
 0x9a9   :  { %v2680_v30 = vpop.f32.mrf.mxu1 }
 0x9aa   :  { %v1312_v12 = vpop.trf.xlu0  ;;  %v1482_v44 = vmul.f32 %v2680_v30, %v3280_v24 }
 0x9ab   :  { %2712 = vmatmul.mubr.msk.f32.gmra.mxu1 %vm380_vm3, %v1312_v12  ;;  %v1190_v25 = vpop.f32.mrf.mxu1 }
 0x9ac   :  { %v1481_v22 = vmul.f32 %v1190_v25, %v3280_v24 }
 0x9ae   :  { %v1313_v14 = vpop.trf.xlu0 }
 0x9af   :  { %2714 = vmatprep.mubr.msk.f32.mxu1 %vm380_vm3, %v1313_v14 }
 0x9b1   :  { %v2683_v31 = vpop.f32.mrf.mxu1 }
 0x9b2   :  { %v1484_v33 = vmul.f32 %v2683_v31, %v3280_v24  ;;  %v1314_v36 = vpop.trf.xlu0 }
 0x9b3   :  { %v1200_v37 = vpop.f32.mrf.mxu1  ;;  %2715 = vmatmul.mubr.msk.f32.gmra.mxu1 %vm380_vm3, %v1314_v36 }
 0x9b4   :  { %v3507_v38 = vsub.f32 %v3285_v29, %v1484_v33  ;;  %v1483_v42 = vmul.f32 %v1200_v37, %v3280_v24  ;;  %2752 = vmatprep.mubr.msk.f32.mxu1 %vm2995_vm0, %v2994_v1  ;;  %v3523_v29 = vsub.f32 %v3301_v4, %v1482_v44  ;;  %v3537_v4 = vsub.f32 %v3317_v7, %v1480_v49 }
 0x9b5   :  { %v3551_v7 = vsub.f32 %v3333_v11, %v1478_v51 }
 0x9b6   :  { %2737 = vmatpush3.xpose.msk.msra.mxu1 %vm102_vm1, %v3507_v38  ;;  %v3517_v20 = vsub.f32 %v3294_v34, %v1483_v42  ;;  %v3531_v34 = vsub.f32 %v3310_v40, %v1481_v22  ;;  %v3545_v40 = vsub.f32 %v3326_v47, %v1479_v39 }
 0x9b7   :  { %2738 = vmatprep.subr.mxu1 %v2994_v1 }
 0x9ba   :  { %2739 = vmatpush3.xpose.msk.msra.mxu1 %vm102_vm1, %v3517_v20 }
 0x9bb   :  { %2740 = vmatprep.subr.mxu1 %v2994_v1 }
 0x9be   :  { %2741 = vmatpush3.xpose.msk.msra.mxu1 %vm102_vm1, %v3523_v29 }
 0x9bf   :  { %2742 = vmatprep.subr.mxu1 %v2994_v1 }
 0x9c2   :  { %2743 = vmatpush3.xpose.msk.msra.mxu1 %vm102_vm1, %v3531_v34 }
 0x9c3   :  { %2744 = vmatprep.subr.mxu1 %v2994_v1 }
 0x9c6   :  { %2745 = vmatpush3.xpose.msk.msra.mxu1 %vm102_vm1, %v3537_v4 }
 0x9c7   :  { %2746 = vmatprep.subr.mxu1 %v2994_v1 }
 0x9ca   :  { %2747 = vmatpush3.xpose.msk.msra.mxu1 %vm102_vm1, %v3545_v40 }
 0x9cb   :  { %2748 = vmatprep.subr.mxu1 %v2994_v1 }
 0x9ce   :  { %2749 = vmatpush3.xpose.msk.msra.mxu1 %vm102_vm1, %v3551_v7 }
 0x9cf   :  { %2750 = vmatprep.subr.mxu1 %v2994_v1 }
 0x9d2   :  { %2751 = vmatpush3.xpose.msk.msra.mxu1 %vm102_vm1, %v3558_v52 }
 0x9d3   :  { %2769 = vmatprep.subr.mxu1 %v2994_v1 }
 0xa5b   :  { %v2707_v47 = vpop.f32.mrf.mxu1 }
 0xa5c   :  { %v1460_v26 = vmul.f32 %v2707_v47, %v3280_v24 }
 0xa5d   :  { %v1413_v53 = vpop.f32.mrf.mxu1 }
 0xa5e   :  { %v1459_v28 = vmul.f32 %v1413_v53, %v3280_v24 }
 0xa60   :  { %v3614_v12 = vsub.f32 %v3399_v27, %v1459_v28 }
 0xa63   :  { %v2710_v54 = vpop.f32.mrf.mxu1 }
 0xa64   :  { %v1462_v19 = vmul.f32 %v2710_v54, %v3280_v24 }
 0xa65   :  { %v1423_v11 = vpop.f32.mrf.mxu1 }
 0xa66   :  { %v1461_v43 = vmul.f32 %v1423_v11, %v3280_v24 }
 0xa6b   :  { %v2713_v55 = vpop.f32.mrf.mxu1 }
 0xa6c   :  { %v1464_v46 = vmul.f32 %v2713_v55, %v3280_v24 }
 0xa6d   :  { %v1433_v56 = vpop.f32.mrf.mxu1 }
 0xa6e   :  { %v1463_v63 = vmul.f32 %v1433_v56, %v3280_v24 }
 0xa73   :  { %v2716_v57 = vpop.f32.mrf.mxu1 }
 0xa74   :  { %v1466_v59 = vmul.f32 %v2716_v57, %v3280_v24 }
 0xa75   :  { %v1443_v18 = vpop.f32.mrf.mxu1 }
 0xa76   :  { %v3565_v32 = vsub.f32 %v3350_v60, %v1466_v59  ;;  %v1465_v13 = vmul.f32 %v1443_v18, %v3280_v24  ;;  %v3579_v60 = vsub.f32 %v3364_v2, %v1464_v46  ;;  %v3593_v2 = vsub.f32 %v3378_v6, %v1462_v19 }
 0xa77   :  { %v3607_v6 = vsub.f32 %v3392_v10, %v1460_v26 }
 0xa78   :  { %2718 = vmatpush3.xpose.msk.msra.mxu0 %vm102_vm1, %v3565_v32  ;;  %v3573_v48 = vsub.f32 %v3358_v62, %v1465_v13  ;;  %v3587_v62 = vsub.f32 %v3372_v3, %v1463_v63  ;;  %v3601_v3 = vsub.f32 %v3386_v8, %v1461_v43  ;;  %v1452_v8 = vsel %vm102_vm1, %v3494_v58, 0.0 }
 0xa79   :  { %2719 = vmatprep.subr.mxu0 %v2994_v1  ;;  %v1453_v10 = vrot.slane %v1452_v8, 4 }
 0xa7b   :  { %v1454_v30 = vadd.f32 %v1453_v10, %v1452_v8 }
 0xa7c   :  { %2720 = vmatpush3.xpose.msk.msra.mxu0 %vm102_vm1, %v3573_v48 }
 0xa7d   :  { %2721 = vmatprep.subr.mxu0 %v2994_v1  ;;  %v1455_v14 = vrot.slane %v1454_v30, 2 }
 0xa7f   :  { %v1456_v25 = vadd.f32 %v1455_v14, %v1454_v30 }
 0xa80   :  { %2722 = vmatpush3.xpose.msk.msra.mxu0 %vm102_vm1, %v3579_v60 }
 0xa81   :  { %2723 = vmatprep.subr.mxu0 %v2994_v1  ;;  %v1457_v31 = vrot.slane %v1456_v25, 1 }
 0xa83   :  { %v1458_v33 = vadd.f32 %v1457_v31, %v1456_v25 }
 0xa84   :  { %2724 = vmatpush3.xpose.msk.msra.mxu0 %vm102_vm1, %v3587_v62 }
 0xa85   :  { %2725 = vmatprep.subr.mxu0 %v2994_v1  ;;  %v1475_v36 = vmul.f32 %v1458_v33, %v3280_v24 }
 0xa87   :  { %v3624_v27 = vsub.f32 %v3409_v16, %v1475_v36  ;;  %v1209_v16 = vsel %vm102_vm1, %v3476_v50, 0.0 }
 0xa88   :  { %2726 = vmatpush3.xpose.msk.msra.mxu0 %vm102_vm1, %v3593_v2  ;;  %v1210_v49 = vrot.slane %v1209_v16, 4 }
 0xa89   :  { %2727 = vmatprep.subr.mxu0 %v2994_v1  ;;  %v1503_v37 = vrot.slane %v3624_v27, %v3187_v21 }
 0xa8a   :  { %v1211_v15 = vadd.f32 %v1210_v49, %v1209_v16 }
 0xa8c   :  { %2728 = vmatpush3.xpose.msk.msra.mxu0 %vm102_vm1, %v3601_v3  ;;  %v1212_v53 = vrot.slane %v1211_v15, 2 }
 0xa8d   :  { %2729 = vmatprep.subr.mxu0 %v2994_v1 }
 0xa8e   :  { %v1213_v11 = vadd.f32 %v1212_v53, %v1211_v15 }
 0xa90   :  { %2730 = vmatpush3.xpose.msk.msra.mxu0 %vm102_vm1, %v3607_v6 }
 0xa91   :  { %2731 = vmatprep.subr.mxu0 %v2994_v1 }
 0xa94   :  { %2732 = vmatpush3.xpose.msk.msra.mxu0 %vm102_vm1, %v3614_v12 }
 0xa97   :  { %2734 = vmatmul.mubr.msk.f32.vlgmr.msra.gmra.mxu0 %vm102_vm1, %v3175_v17 }
 0xb57   :  { %v1595_v42 = vpop.f32.mrf.mxu0 }
 0xb58   :  { %v3628_v44 = vadd.f32 %v1595_v42, %v1503_v37 }
 0xb59   :  { %v2735_v22 = vpop.f32.mrf.mxu0 }
 0xb5a   :  { %v1599_v58 = vmax.f32 %v3628_v44, 0.0  ;;  %vm1987_vm11 = vcmp.gt.f32.partialorder %v3628_v44, 0.0 }
 0xb5c   :  { %2753 = vmatmul.mubr.msk.f32.vlgmr.msra.gmra.mxu1 %vm102_vm1, %v1599_v58  ;;  %2755 = vmatprep.subr.mxu0 %v1599_v58 }
 0xb5d   :  { %2770 = vmatpush3.msra.mxu1 %v3507_v38  ;;  %2756 = vmatpush3.msra.mxu0 %v1599_v58 }
 0xb5e   :  { %2771 = vmatprep.subr.mxu1 %v2994_v1  ;;  %2785 = vmatprep.mubr.msk.f32.mxu1 %vm2995_vm0, %v2994_v1 }
 0xb5f   :  { %2772 = vmatpush3.msra.mxu1 %v3517_v20  ;;  %2788 = vmatprep.subr.mxu0 %v3175_v17  ;;  %v1030_v17 = vmul.f32 %v3472_v45, %v1005_v23 }
 0xb60   :  { %2773 = vmatprep.subr.mxu1 %v2994_v1 }
 0xb61   :  { %2774 = vmatpush3.msra.mxu1 %v3523_v29  ;;  %v1031_v39 = vsel %vm102_vm1, %v1030_v17, 0.0 }
 0xb62   :  { %2775 = vmatprep.subr.mxu1 %v2994_v1  ;;  %v1032_v51 = vrot.slane %v1031_v39, 4 }
 0xb63   :  { %2776 = vmatpush3.msra.mxu1 %v3531_v34 }
 0xb64   :  { %2777 = vmatprep.subr.mxu1 %v2994_v1  ;;  %v1033_v47 = vadd.f32 %v1032_v51, %v1031_v39 }
 0xb65   :  { %2778 = vmatpush3.msra.mxu1 %v3537_v4 }
 0xb66   :  { %2779 = vmatprep.subr.mxu1 %v2994_v1  ;;  %v1034_v54 = vrot.slane %v1033_v47, 2 }
 0xb67   :  { %2780 = vmatpush3.msra.mxu1 %v3545_v40 }
 0xb68   :  { %2781 = vmatprep.subr.mxu1 %v2994_v1  ;;  %v1035_v55 = vadd.f32 %v1034_v54, %v1033_v47 }
 0xb69   :  { %2782 = vmatpush3.msra.mxu1 %v3551_v7 }
 0xb6a   :  { %2783 = vmatprep.subr.mxu1 %v2994_v1  ;;  %v1214_v1 = vrot.slane %v1213_v11, 1  ;;  %v1036_v56 = vrot.slane %v1035_v55, 1 }
 0xb6b   :  { %2784 = vmatpush3.msra.mxu1 %v3558_v52 }
 0xb6c   :  { %v1215_v57 = vadd.f32 %v1214_v1, %v1213_v11  ;;  %v1037_v59 = vadd.f32 %v1036_v56, %v1035_v55 }
 0xb6e   :  { %v1493_v0 = vmul.f32 %v1215_v57, %v3280_v24  ;;  %v1495_v45 = vmul.f32 %v1037_v59, %v3280_v24 }
 0xb70   :  { %v3658_v23 = vsub.f32 %v3444_v35, %v1493_v0  ;;  %v1496_v18 = vsub.f32 %v3450_v61, %v1495_v45  ;;  %v1038_v35 = vsel %vm337_vm5, %v3469_v9, 0.0 }
 0xb71   :  { %v1039_v8 = vrot.slane %v1038_v35, 4 }
 0xb72   :  { %v1604_v50 = vrot.slane %v3658_v23, %v3187_v21  ;;  %v1708_v43 = vrot.slane %v1496_v18, %v3187_v21 }
 0xb73   :  { %v1040_v10 = vadd.f32 %v1039_v8, %v1038_v35 }
 0xb75   :  { %v1041_v30 = vrot.slane %v1040_v10, 2 }
 0xb77   :  { %v1042_v14 = vadd.f32 %v1041_v30, %v1040_v10 }
 0xb79   :  { %v1043_v25 = vrot.slane %v1042_v14, 1 }
 0xb7b   :  { %v1044_v31 = vadd.f32 %v1043_v25, %v1042_v14  ;;  %v2817_v14 = vld [vmem:[%s3779_s1] sm:$0xff]  ;;  %s2997_s1 = smov [#allocation10]  }
 0xb7c   :  { %s2237_s17 = sshll.u32 %s2997_s1, 4  ;;  %s2238_s17 = int_to_ptr.vmem [resolvable:$true] %s2237_s17 }
 0xb7d   :  { %v1497_v61 = vmul.f32 %v1044_v31, %v3280_v24  ;;  %s2858_s21 = scalar_lea.vmem %s2238_s17, 16  ;;  %s2862_s22 = scalar_lea.vmem %s2238_s17, 32 }
 0xb7e   :  { %p2859_p10 = scmp.ne.s32.totalorder %s2238_s17, %s2858_s21  ;;  %p2863_p11 = scmp.lt.s32.totalorder %s2238_s17, %s2238_s17 }
 0xb7f   :  { %v1498_v33 = vsub.f32 %v3464_v5, %v1497_v61  ;;  %p2864_p12 = scmp.lt.s32.totalorder %s2862_s22, %s2858_s21 }
 0xb81   :  { %v1718_v36 = vrot.slane %v1498_v33, %v3187_v21  ;;  %p2865_p13 = por %p2864_p12, %p2863_p11 }
 0xb83   :  { %p2866_p0 = pnand %p2865_p13, %p2859_p10 }
 0xc1c   :  { %v1699_v13 = vpop.f32.mrf.mxu1 }
 0xc1d   :  { %v1700_v46 = vadd.f32 %v1699_v13, %v1604_v50 }
 0xc1e   :  { %v2754_v63 = vpop.f32.mrf.mxu1 }
 0xc1f   :  { %v1703_v19 = vmax.f32 %v1700_v46, 0.0  ;;  %vm1744_vm9 = vcmp.gt.f32.partialorder %v1700_v46, 0.0 }
 0xc21   :  { %v1710_v26 = vmul.f32 %v1708_v43, %v1703_v19 }
 0xc23   :  { %v1711_v28 = vsel %vm102_vm1, %v1710_v26, 0.0 }
 0xc24   :  { %1712 = vadd.xlane.f32.xlu1 %v1711_v28 }
 0xcad   :  { %v1713_v37 = vpop.xlane.xlu1 %1712 }
 0xcae   :  { %v1720_v42 = vadd.f32 %v1718_v36, %v1713_v37 }
 0xcb0   :  { %v1721_v22 = vsub.f32 %v1720_v42, %v3229_v41 }
 0xcb2   :  { %v1722_v58 = vmul.f32 0.25, %v1721_v22 }
 0xcb4   :  { %v1736_v17 = vsel %vm337_vm5, %v1722_v58, 0.0  ;;  %1725 = vperm.xlu1 %2816, %v1722_v58  }
 0xcb5   :  { %v1737_v9 = vrot.slane %v1736_v17, 4 }
 0xcb7   :  { %v1738_v16 = vadd.f32 %v1737_v9, %v1736_v17 }
 0xcb9   :  { %v1739_v49 = vrot.slane %v1738_v16, 2 }
 0xcbb   :  { %v1740_v39 = vadd.f32 %v1739_v49, %v1738_v16 }
 0xcbd   :  { %v1741_v51 = vrot.slane %v1740_v39, 1 }
 0xcbf   :  { %v1742_v15 = vadd.f32 %v1741_v51, %v1740_v39 }
 0xcc1   :  { %v2195_v47 = vmul.f32 %v1742_v15, %v3280_v24 }
 0xcc3   :  { %v2196_v5 = vsub.f32 %v1498_v33, %v2195_v47 }
 0xcc5   :  { %2218 = vst.msk [vmem:[#allocation16] sm:$0x1] %vm2217_vm8, %v2196_v5 }
 0xd2f   :  { %v1726_v21 = vpop.permute.xlu1 %1725 }
 0xd30   :  { %v1728_v53 = vmul.f32 %v1726_v21, %v1703_v19  ;;  %v1743_v54 = vmul.f32 %v1726_v21, %v1708_v43 }
 0xd32   :  { %v1729_v41 = vsel %vm102_vm1, %v1728_v53, 0.0  ;;  %v1745_v11 = vsel %vm1744_vm9, %v1743_v54, 0.0 }
 0xd33   :  { %v1730_v55 = vrot.slane %v1729_v41, 4  ;;  %1746 = vxpose.xlu0.b32.start.end [1/1] (short) (narrow) %v1745_v11, 64  ;;  %v1907_v1 = vsel %vm102_vm1, %v1745_v11, 0.0  ;;  %2786 = vmatmul.mubr.msk.f32.vlgmr.msra.gmra.mxu1 %vm102_vm1, %v1745_v11 }
 0xd34   :  { %v1908_v56 = vrot.slane %v1907_v1, 4 }
 0xd35   :  { %v1731_v57 = vadd.f32 %v1730_v55, %v1729_v41 }
 0xd36   :  { %v1909_v59 = vadd.f32 %v1908_v56, %v1907_v1 }
 0xd37   :  { %v1732_v0 = vrot.slane %v1731_v57, 2 }
 0xd38   :  { %v1910_v45 = vrot.slane %v1909_v59, 2 }
 0xd39   :  { %v1733_v50 = vadd.f32 %v1732_v0, %v1731_v57 }
 0xd3a   :  { %v1911_v13 = vadd.f32 %v1910_v45, %v1909_v59 }
 0xd3b   :  { %v1734_v63 = vrot.slane %v1733_v50, 1 }
 0xd3c   :  { %v1912_v19 = vrot.slane %v1911_v13, 1 }
 0xd3d   :  { %v1735_v43 = vadd.f32 %v1734_v63, %v1733_v50 }
 0xd3e   :  { %v1913_v46 = vadd.f32 %v1912_v19, %v1911_v13 }
 0xd3f   :  { %v2193_v26 = vmul.f32 %v1735_v43, %v3280_v24 }
 0xd40   :  { %v2191_v28 = vmul.f32 %v1913_v46, %v3280_v24 }
 0xd41   :  { %v2194_v35 = vsub.f32 %v1496_v18, %v2193_v26 }
 0xd42   :  { %v2192_v8 = vsub.f32 %v3658_v23, %v2191_v28 }
 0xd43   :  { %2216 = vst.msk [vmem:[#allocation15] sm:$0x1] %vm2205_vm10, %v2194_v35 }
 0xd44   :  { %2215 = vst.msk [vmem:[#allocation13] sm:$0x1] %vm2205_vm10, %v2192_v8 }
 0xdaf   :  { %v1762_v10 = vpop.trf.xlu0 }
 0xdb0   :  { %2757 = vmatprep.mubr.msk.f32.mxu0 %vm380_vm3, %v1762_v10 }
 0xdb3   :  { %v1763_v30 = vpop.trf.xlu0 }
 0xdb4   :  { %2758 = vmatmul.mubr.msk.f32.vlgmr.msra.gmra.mxu0 %vm380_vm3, %v1763_v30 }
 0xdb5   :  { %2789 = vmatpush3.msra.mxu0 %v2817_v14 }
 0xdb7   :  { %v1764_v25 = vpop.trf.xlu0 }
 0xdb8   :  { %2760 = vmatprep.mubr.msk.f32.mxu0 %vm380_vm3, %v1764_v25 }
 0xdbb   :  { %v1765_v18 = vpop.trf.xlu0 }
 0xdbc   :  { %2761 = vmatmul.mubr.msk.f32.gmra.mxu0 %vm380_vm3, %v1765_v18 }
 0xdbf   :  { %v1766_v23 = vpop.trf.xlu0 }
 0xdc0   :  { %2763 = vmatprep.mubr.msk.f32.mxu0 %vm380_vm3, %v1766_v23 }
 0xdc3   :  { %v1767_v31 = vpop.trf.xlu0 }
 0xdc4   :  { %2764 = vmatmul.mubr.msk.f32.gmra.mxu0 %vm380_vm3, %v1767_v31 }
 0xdc7   :  { %v1768_v61 = vpop.trf.xlu0 }
 0xdc8   :  { %2766 = vmatprep.mubr.msk.f32.mxu0 %vm380_vm3, %v1768_v61 }
 0xdcb   :  { %v1769_v33 = vpop.trf.xlu0 }
 0xdcc   :  { %2767 = vmatmul.mubr.msk.f32.gmra.mxu0 %vm380_vm3, %v1769_v33 }
 0xdf3   :  { %v1983_v36 = vpop.f32.mrf.mxu1 }
 0xdf4   :  { %v1988_v37 = vsel %vm1987_vm11, %v1983_v36, 0.0 }
 0xdf5   :  { %v2150_v42 = vsel %vm102_vm1, %v1988_v37, 0.0  ;;  %1989 = vxpose.xlu1.b32.start.end [1/1] (short) (narrow) %v1988_v37, 64  ;;  %v2787_v22 = vpop.f32.mrf.mxu1 }
 0xdf6   :  { %v2151_v58 = vrot.slane %v2150_v42, 4 }
 0xdf8   :  { %v2152_v17 = vadd.f32 %v2151_v58, %v2150_v42 }
 0xdfa   :  { %v2153_v9 = vrot.slane %v2152_v17, 2 }
 0xdfc   :  { %v2154_v16 = vadd.f32 %v2153_v9, %v2152_v17 }
 0xdfe   :  { %v2155_v49 = vrot.slane %v2154_v16, 1 }
 0xe00   :  { %v2156_v39 = vadd.f32 %v2155_v49, %v2154_v16 }
 0xe02   :  { %v2173_v51 = vmul.f32 %v2156_v39, %v3280_v24 }
 0xe04   :  { %v2174_v15 = vsub.f32 %v3624_v27, %v2173_v51 }
 0xe06   :  { %2206 = vst.msk [vmem:[#allocation10] sm:$0x1] %vm2205_vm10, %v2174_v15 }
 0xe71   :  { %v2005_v47 = vpop.trf.xlu1 }
 0xe72   :  { %2790 = vmatprep.mubr.msk.f32.mxu0 %vm380_vm3, %v2005_v47 }
 0xe74   :  { %v2759_v44 = vpop.f32.mrf.mxu0 }
 0xe75   :  { %v2176_v5 = vmul.f32 %v2759_v44, %v3280_v24  ;;  %v2006_v21 = vpop.trf.xlu1 }
 0xe76   :  { %v1868_v53 = vpop.f32.mrf.mxu0  ;;  %2791 = vmatmul.mubr.msk.f32.vlgmr.msra.gmra.mxu0 %vm380_vm3, %v2006_v21 }
 0xe77   :  { %v2184_v54 = vsub.f32 %v3551_v7, %v2176_v5  ;;  %v2175_v41 = vmul.f32 %v1868_v53, %v3280_v24 }
 0xe79   :  { %2208 = vst.msk [vmem:[#allocation12 + $0x8] sm:$0xff] %vm102_vm1, %v2184_v54  ;;  %v2183_v27 = vsub.f32 %v3558_v52, %v2175_v41  ;;  %v2007_v11 = vpop.trf.xlu1 }
 0xe7a   :  { %2793 = vmatprep.mubr.msk.f32.mxu0 %vm380_vm3, %v2007_v11 }
 0xe7b   :  { %2207 = vst.msk [vmem:[#allocation12] sm:$0xff] %vm102_vm1, %v2183_v27 }
 0xe7c   :  { %v2762_v55 = vpop.f32.mrf.mxu0 }
 0xe7d   :  { %v2178_v1 = vmul.f32 %v2762_v55, %v3280_v24  ;;  %v2008_v56 = vpop.trf.xlu1 }
 0xe7e   :  { %v1878_v57 = vpop.f32.mrf.mxu0  ;;  %2794 = vmatmul.mubr.msk.f32.gmra.mxu0 %vm380_vm3, %v2008_v56 }
 0xe7f   :  { %v2186_v7 = vsub.f32 %v3537_v4, %v2178_v1  ;;  %v2177_v59 = vmul.f32 %v1878_v57, %v3280_v24 }
 0xe81   :  { %2210 = vst.msk [vmem:[#allocation12 + $0x18] sm:$0xff] %vm102_vm1, %v2186_v7  ;;  %v2185_v52 = vsub.f32 %v3545_v40, %v2177_v59  ;;  %v2009_v0 = vpop.trf.xlu1 }
 0xe82   :  { %2796 = vmatprep.mubr.msk.f32.mxu0 %vm380_vm3, %v2009_v0 }
 0xe83   :  { %2209 = vst.msk [vmem:[#allocation12 + $0x10] sm:$0xff] %vm102_vm1, %v2185_v52 }
 0xe84   :  { %v2765_v45 = vpop.f32.mrf.mxu0 }
 0xe85   :  { %v2180_v50 = vmul.f32 %v2765_v45, %v3280_v24  ;;  %v2010_v13 = vpop.trf.xlu1 }
 0xe86   :  { %v1888_v63 = vpop.f32.mrf.mxu0  ;;  %2797 = vmatmul.mubr.msk.f32.gmra.mxu0 %vm380_vm3, %v2010_v13 }
 0xe87   :  { %v2188_v4 = vsub.f32 %v3523_v29, %v2180_v50  ;;  %v2179_v19 = vmul.f32 %v1888_v63, %v3280_v24 }
 0xe89   :  { %2212 = vst.msk [vmem:[#allocation12 + $0x28] sm:$0xff] %vm102_vm1, %v2188_v4  ;;  %v2187_v40 = vsub.f32 %v3531_v34, %v2179_v19  ;;  %v2011_v43 = vpop.trf.xlu1 }
 0xe8a   :  { %2799 = vmatprep.mubr.msk.f32.mxu0 %vm380_vm3, %v2011_v43 }
 0xe8b   :  { %2211 = vst.msk [vmem:[#allocation12 + $0x20] sm:$0xff] %vm102_vm1, %v2187_v40 }
 0xe8c   :  { %v2768_v46 = vpop.f32.mrf.mxu0 }
 0xe8d   :  { %v2182_v26 = vmul.f32 %v2768_v46, %v3280_v24  ;;  %v2012_v28 = vpop.trf.xlu1 }
 0xe8e   :  { %v1898_v35 = vpop.f32.mrf.mxu0  ;;  %2800 = vmatmul.mubr.msk.f32.gmra.mxu0 %vm380_vm3, %v2012_v28 }
 0xe8f   :  { %v2190_v29 = vsub.f32 %v3507_v38, %v2182_v26  ;;  %v2181_v8 = vmul.f32 %v1898_v35, %v3280_v24 }
 0xe91   :  { %2214 = vst.msk [vmem:[#allocation12 + $0x38] sm:$0xff] %vm102_vm1, %v2190_v29  ;;  %v2189_v34 = vsub.f32 %v3517_v20, %v2181_v8 }
 0xe93   :  { %2213 = vst.msk [vmem:[#allocation12 + $0x30] sm:$0xff] %vm102_vm1, %v2189_v34 }
 0xe94   :  { %2869 = shalt.err (!%p2866_p0)
}
 0xe95   :  { %2240 = dma.vmem_to_hbm [thread:$0]  %s2238_s17, 16, %s3788_s10, [#allocation11]  }
 0xe96   :  { %s2878_s25 = scalar_lea.vmem %s2260_s20, 16  ;;  %s2882_s3 = scalar_lea.vmem %s2260_s20, 32 }
 0xe97   :  { %p2879_p1 = scmp.ne.s32.totalorder %s2260_s20, %s2878_s25  ;;  %p2883_p2 = scmp.lt.s32.totalorder %s2260_s20, %s2260_s20 }
 0xe98   :  { %p2884_p3 = scmp.lt.s32.totalorder %s2882_s3, %s2878_s25 }
 0xe9a   :  { %p2885_p4 = por %p2884_p3, %p2883_p2 }
 0xe9c   :  { %p2886_p5 = pnand %p2885_p4, %p2879_p1 }
 0xe9e   :  { %2889 = shalt.err (!%p2886_p5)
}
 0xe9f   :  { %2262 = dma.vmem_to_hbm [thread:$0]  %s2260_s20, 16, %s3790_s12, [#allocation14]  }
 0xea0   :  { %s2999_s27 = smov [#allocation12]  }
 0xea1   :  { %s2246_s28 = sshll.u32 %s2999_s27, 4  ;;  %s2247_s28 = int_to_ptr.vmem [resolvable:$true] %s2246_s28 }
 0xea2   :  { %s2898_s29 = scalar_lea.vmem %s2247_s28, 1024  ;;  %p2903_p7 = scmp.lt.s32.totalorder %s2247_s28, %s2247_s28 }
 0xea3   :  { %p2899_p6 = scmp.ne.s32.totalorder %s2247_s28, %s2898_s29  ;;  %p2904_p8 = scmp.lt.s32.totalorder %s2898_s29, %s2898_s29 }
 0xea5   :  { %p2905_p9 = por %p2904_p8, %p2903_p7 }
 0xea7   :  { %p2906_p10 = pnand %p2905_p9, %p2899_p6 }
 0xea9   :  { %2909 = shalt.err (!%p2906_p10)
}
 0xeaa   :  { %2252 = dma.vmem_to_hbm [thread:$0]  %s2247_s28, 1024, %s3789_s11, [#allocation11], %s2991_s18, %s2991_s18, %s2992_s19  }
 0xeab   :  { %s3000_s30 = smov [#allocation15]   ;;  %s3001_s12 = smov [#allocation16]  }
 0xeac   :  { %s2269_s6 = sshll.u32 %s3000_s30, 4  ;;  %s2279_s7 = sshll.u32 %s3001_s12, 4  ;;  %s2270_s6 = int_to_ptr.vmem [resolvable:$true] %s2269_s6  ;;  %s2280_s7 = int_to_ptr.vmem [resolvable:$true] %s2279_s7 }
 0xead   :  { %s2918_s2 = scalar_lea.vmem %s2270_s6, 16  ;;  %s2922_s15 = scalar_lea.vmem %s2270_s6, 32 }
 0xeae   :  { %p2919_p11 = scmp.ne.s32.totalorder %s2270_s6, %s2918_s2  ;;  %p2923_p12 = scmp.lt.s32.totalorder %s2270_s6, %s2270_s6 }
 0xeaf   :  { %p2924_p13 = scmp.lt.s32.totalorder %s2922_s15, %s2918_s2 }
 0xeb1   :  { %p2925_p0 = por %p2924_p13, %p2923_p12 }
 0xeb3   :  { %p2926_p1 = pnand %p2925_p0, %p2919_p11 }
 0xeb5   :  { %2929 = shalt.err (!%p2926_p1)
}
 0xeb6   :  { %2272 = dma.vmem_to_hbm [thread:$0]  %s2270_s6, 16, %s3791_s13, [#allocation14]  }
 0xeb7   :  { %s2938_s1 = scalar_lea.vmem %s2280_s7, 16  ;;  %s2942_s11 = scalar_lea.vmem %s2280_s7, 32 }
 0xeb8   :  { %p2939_p2 = scmp.ne.s32.totalorder %s2280_s7, %s2938_s1  ;;  %p2943_p3 = scmp.lt.s32.totalorder %s2280_s7, %s2280_s7 }
 0xeb9   :  { %p2944_p4 = scmp.lt.s32.totalorder %s2942_s11, %s2938_s1 }
 0xebb   :  { %p2945_p5 = por %p2944_p4, %p2943_p3 }
 0xebd   :  { %p2946_p6 = pnand %p2945_p5, %p2939_p2 }
 0xebf   :  { %2949 = shalt.err (!%p2946_p6)
}
 0xec0   :  { %2282 = dma.vmem_to_hbm [thread:$0]  %s2280_s7, 16, %s3792_s14, [#allocation17]  }
 0xec1   :  { %s3002_s13 = smov [#allocation9]  }
 0xec2   :  { %s2224_s14 = sshll.u32 %s3002_s13, 4  ;;  %s2225_s14 = int_to_ptr.vmem [resolvable:$true] %s2224_s14 }
 0xec3   :  { %s2958_s20 = scalar_lea.vmem %s2225_s14, 1024  ;;  %p2963_p8 = scmp.lt.s32.totalorder %s2225_s14, %s2225_s14 }
 0xec4   :  { %p2959_p7 = scmp.ne.s32.totalorder %s2225_s14, %s2958_s20  ;;  %p2964_p9 = scmp.lt.s32.totalorder %s2958_s20, %s2958_s20 }
 0xec6   :  { %p2965_p10 = por %p2964_p9, %p2963_p8 }
 0xec8   :  { %p2966_p11 = pnand %p2965_p10, %p2959_p7 }
 0xf36   :  { %v2792_v38 = vpop.f32.mrf.mxu0 }
 0xf37   :  { %v2158_v20 = vmul.f32 %v2792_v38, %v3280_v24 }
 0xf38   :  { %v2111_v10 = vpop.f32.mrf.mxu0 }
 0xf39   :  { %v2166_v30 = vsub.f32 %v3607_v6, %v2158_v20  ;;  %v2157_v14 = vmul.f32 %v2111_v10, %v3280_v24 }
 0xf3b   :  { %2198 = vst.msk [vmem:[#allocation9 + $0x8] sm:$0xff] %vm102_vm1, %v2166_v30  ;;  %v2165_v25 = vsub.f32 %v3614_v12, %v2157_v14 }
 0xf3d   :  { %2197 = vst.msk [vmem:[#allocation9] sm:$0xff] %vm102_vm1, %v2165_v25 }
 0xf3e   :  { %v2795_v18 = vpop.f32.mrf.mxu0 }
 0xf3f   :  { %v2160_v23 = vmul.f32 %v2795_v18, %v3280_v24 }
 0xf40   :  { %v2121_v31 = vpop.f32.mrf.mxu0 }
 0xf41   :  { %v2168_v61 = vsub.f32 %v3593_v2, %v2160_v23  ;;  %v2159_v33 = vmul.f32 %v2121_v31, %v3280_v24 }
 0xf43   :  { %2200 = vst.msk [vmem:[#allocation9 + $0x18] sm:$0xff] %vm102_vm1, %v2168_v61  ;;  %v2167_v6 = vsub.f32 %v3601_v3, %v2159_v33 }
 0xf45   :  { %2199 = vst.msk [vmem:[#allocation9 + $0x10] sm:$0xff] %vm102_vm1, %v2167_v6 }
 0xf46   :  { %v2798_v36 = vpop.f32.mrf.mxu0 }
 0xf47   :  { %v2162_v37 = vmul.f32 %v2798_v36, %v3280_v24 }
 0xf48   :  { %v2131_v12 = vpop.f32.mrf.mxu0 }
 0xf49   :  { %v2170_v42 = vsub.f32 %v3579_v60, %v2162_v37  ;;  %v2161_v22 = vmul.f32 %v2131_v12, %v3280_v24 }
 0xf4b   :  { %2202 = vst.msk [vmem:[#allocation9 + $0x28] sm:$0xff] %vm102_vm1, %v2170_v42  ;;  %v2169_v2 = vsub.f32 %v3587_v62, %v2161_v22 }
 0xf4d   :  { %2201 = vst.msk [vmem:[#allocation9 + $0x20] sm:$0xff] %vm102_vm1, %v2169_v2 }
 0xf4e   :  { %v2801_v58 = vpop.f32.mrf.mxu0 }
 0xf4f   :  { %v2164_v17 = vmul.f32 %v2801_v58, %v3280_v24 }
 0xf50   :  { %v2141_v3 = vpop.f32.mrf.mxu0 }
 0xf51   :  { %v2172_v9 = vsub.f32 %v3565_v32, %v2164_v17  ;;  %v2163_v16 = vmul.f32 %v2141_v3, %v3280_v24 }
 0xf53   :  { %2204 = vst.msk [vmem:[#allocation9 + $0x38] sm:$0xff] %vm102_vm1, %v2172_v9  ;;  %v2171_v60 = vsub.f32 %v3573_v48, %v2163_v16 }
 0xf55   :  { %2203 = vst.msk [vmem:[#allocation9 + $0x30] sm:$0xff] %vm102_vm1, %v2171_v60 }
 0xf56   :  { %2969 = shalt.err (!%p2966_p11)
}
 0xf57   :  { %2230 = dma.vmem_to_hbm [thread:$0]  %s2225_s14, 1024, %s3787_s9, [#allocation6], %s2991_s18, %s2991_s18, %s2992_s19  }
 0xf58   :  { %2982 = dma.done.wait [#allocation6], 1024  }
 0xf59   :  { %2983 = vsyncadd [#allocation6], 4294966272 }
 0xf5a   :  { %2984 = dma.done.wait [#allocation11], 1040  }
 0xf5b   :  { %2985 = vsyncadd [#allocation11], 4294966256 }
 0xf5c   :  { %2986 = dma.done.wait [#allocation14], 32  }
 0xf5d   :  { %2987 = vsyncadd [#allocation14], 4294967264 }
 0xf5e   :  { %2988 = dma.done.wait [#allocation17], 16  }
 0xf5f   :  { %2989 = vsyncadd [#allocation17], 4294967280 }
 0xf60   :  { %2301 = vsyncpa [#allocation5], 1 }
 0xf61   :  { %2302 = vsyncpa [#allocation8], 1 }
 0xf62   :  { %2303 = vsyncpa [#allocation6], 1 }
 0xf63   :  { %2304 = vsyncpa [#allocation11], 1 }
 0xf64   :  { %2305 = vsyncpa [#allocation14], 1 }
 0xf65   :  { %2306 = vsyncpa [#allocation17], 1 }

</bundles_post_ra>
